<compile_context>
chip_gen: v7x
topology: tpu7x:2x2x1
jax: 0.10.0
libtpu: 0.0.40
codegen_flags: <defaults>
</compile_context>

<pallas_src>
import functools

import jax
import jax.numpy as jnp
from jax import lax
from jax.experimental import pallas as pl
from jax.experimental.pallas import tpu as pltpu


# --------------------------------------------------------------------------- #
# Pallas kernels
# --------------------------------------------------------------------------- #
def _conv_lrelu_kernel(w_ref, pT_ref, o_ref):
    """out[Cout, M] = LeakyReLU_0.2( W @ patchesT )  (f32 MXU accumulation)."""
    y = jnp.dot(w_ref[...], pT_ref[...], preferred_element_type=jnp.float32)
    y = jnp.maximum(y, 0.2 * y)
    o_ref[...] = y.astype(o_ref.dtype)


def _conv_bn_lrelu_kernel(w_ref, pT_ref, gb_ref, o_ref, *, eps, inv_m):
    """Fused GEMM + training-mode BatchNorm (batch stats, biased variance,
    two-pass/centered) + LeakyReLU(0.2), all while the (Cout, M) tile is
    resident in VMEM."""
    y = jnp.dot(w_ref[...], pT_ref[...], preferred_element_type=jnp.float32)
    gb = gb_ref[...]                               # (Cout, 2): [:,0]=gamma, [:,1]=beta
    mean = jnp.sum(y, axis=1, keepdims=True) * inv_m
    yc = y - mean
    var = jnp.sum(yc * yc, axis=1, keepdims=True) * inv_m
    y = yc * (gb[:, 0:1] * lax.rsqrt(var + eps)) + gb[:, 1:2]
    y = jnp.maximum(y, 0.2 * y)
    o_ref[...] = y.astype(o_ref.dtype)


def _tail_kernel(w4_ref, p4_ref, gb_ref, linw_ref, linb_ref, tT_ref,
                 w5img_ref, w5txt_ref, g_ref, o_ref, *, eps, inv_m):
    """conv4-GEMM + BN3 + LeakyReLU + linear + LeakyReLU + concat + conv5 +
    exact sigmoid, fully fused.  conv5 (k=4, p=0 on a 4x4 map) is a per-batch
    dot product -> elementwise multiply + sublane reduce + group-sum GEMM."""
    # conv4 + BN3 + LeakyReLU  (f32 accumulation / stats)
    y = jnp.dot(w4_ref[...], p4_ref[...], preferred_element_type=jnp.float32)   # (C4, M4)
    gb = gb_ref[...]
    mean = jnp.sum(y, axis=1, keepdims=True) * inv_m
    yc = y - mean
    var = jnp.sum(yc * yc, axis=1, keepdims=True) * inv_m
    y = yc * (gb[:, 0:1] * lax.rsqrt(var + eps)) + gb[:, 1:2]
    y = jnp.maximum(y, 0.2 * y)                                                 # (C4, M4)

    # text branch: t = LeakyReLU(lin_w @ t_input^T + lin_b) -> (t_out, B)
    t = jnp.dot(linw_ref[...], tT_ref[...],
                preferred_element_type=jnp.float32) + linb_ref[...]
    t = jnp.maximum(t, 0.2 * t)                                                 # (16, B)

    # conv5: logit[b] = sum_{c,h,w} W5[c,h,w]*y4[c,b,h,w]
    #                 + sum_{h,w}   W5[C4,h,w]*t_img[b,h,w]
    col = jnp.sum(y * w5img_ref[...], axis=0, keepdims=True)                    # (1, M4)
    img = jnp.dot(col, g_ref[...], preferred_element_type=jnp.float32)          # (1, B)
    txt = jnp.sum(w5txt_ref[...] * t, axis=0, keepdims=True)                    # (1, B)
    logit = img + txt
    o_ref[...] = (1.0 / (1.0 + jnp.exp(-logit))).astype(o_ref.dtype)            # exact sigmoid


# --------------------------------------------------------------------------- #
# pallas_call wrapper (gridless: every layer fits VMEM at this configuration)
# --------------------------------------------------------------------------- #
def _vmem_spec():
    return pl.BlockSpec(memory_space=pltpu.MemorySpace.VMEM)


def _fused_call(kernel, out_shape, n_in):
    return pl.pallas_call(
        kernel,
        out_shape=out_shape,
        in_specs=[_vmem_spec() for _ in range(n_in)],
        out_specs=_vmem_spec(),
    )


# --------------------------------------------------------------------------- #
# Thin XLA glue: transposed im2col in channel-first layout
# --------------------------------------------------------------------------- #
def im2col_t(x_cbhw, k, stride, pad):
    """(C, B, H, W) -> patchesT (C*k*k, B*Ho*Wo).  K ordered (c, kh, kw) to
    match PyTorch OIHW weights reshaped to (Cout, Cin*k*k); M ordered (b, oh, ow)."""
    c, b, h, w = x_cbhw.shape
    ho = (h + 2 * pad - k) // stride + 1
    wo = (w + 2 * pad - k) // stride + 1
    xp = jnp.pad(x_cbhw, ((0, 0), (0, 0), (pad, pad), (pad, pad)))
    taps = []
    for kh in range(k):
        for kw in range(k):
            taps.append(
                xp[:, :, kh: kh + stride * ho: stride, kw: kw + stride * wo: stride])
    p = jnp.stack(taps, axis=1)                        # (C, k*k, B, Ho, Wo)
    return p.reshape(c * k * k, b * ho * wo), ho, wo


def fused_conv_act(x_cbhw, w_oihw, k, stride, pad, bn=None, eps=1e-5):
    """One fused Pallas kernel: conv-as-GEMM [+ BN] + LeakyReLU.
    (Cin, B, H, W) bf16 -> (Cout, B, Ho, Wo) bf16."""
    cout = w_oihw.shape[0]
    pT, ho, wo = im2col_t(x_cbhw, k, stride, pad)                  # (K, M) bf16
    kk, m = pT.shape
    w2 = w_oihw.reshape(cout, kk).astype(jnp.bfloat16)
    out_shape = jax.ShapeDtypeStruct((cout, m), jnp.bfloat16)
    if bn is None:
        y = _fused_call(_conv_lrelu_kernel, out_shape, 2)(w2, pT)
    else:
        gamma, beta = bn
        gb = jnp.stack([gamma, beta], axis=1).astype(jnp.float32)  # (Cout, 2)
        y = _fused_call(
            functools.partial(_conv_bn_lrelu_kernel, eps=eps, inv_m=1.0 / m),
            out_shape, 3)(w2, pT, gb)
    return y.reshape(cout, x_cbhw.shape[1], ho, wo)


def fused_tail(x_cbhw, params, t_input, eps=1e-5):
    """Fused conv4+BN3+LReLU + linear+LReLU + concat + conv5 + sigmoid -> (1, B) f32."""
    c4 = params["conv4_w"].shape[0]
    b = x_cbhw.shape[1]
    p4T, ho, wo = im2col_t(x_cbhw, 4, 2, 1)                        # (C3*16, B*16) bf16
    m4 = p4T.shape[1]
    spp = ho * wo                                                  # spatial positions per image (16)
    w4 = params["conv4_w"].reshape(c4, -1).astype(jnp.bfloat16)
    gb3 = jnp.stack([params["bn3_g"], params["bn3_b"]], axis=1).astype(jnp.float32)
    linw = params["lin_w"].astype(jnp.float32)                     # (t_out, t_in)
    linb = params["lin_b"].reshape(-1, 1).astype(jnp.float32)      # (t_out, 1)
    tT = t_input.T.astype(jnp.float32)                             # (t_in, B)
    w5 = params["conv5_w"].astype(jnp.float32)                     # (1, C4+1, 4, 4)
    w5img = jnp.tile(w5[0, :c4].reshape(c4, spp), (1, b))          # (C4, M4), tiled per batch
    w5txt = w5[0, c4].reshape(spp, 1)                              # (16, 1) text-channel weights
    # constant group-sum matrix: gmat[m, bb] = 1 iff column m belongs to image bb
    gmat = (jnp.arange(m4)[:, None] // spp == jnp.arange(b)[None, :]).astype(jnp.float32)
    return _fused_call(
        functools.partial(_tail_kernel, eps=eps, inv_m=1.0 / m4),
        jax.ShapeDtypeStruct((1, b), jnp.float32), 9,
    )(w4, p4T, gb3, linw, linb, tT, w5img, w5txt, gmat)


# --------------------------------------------------------------------------- #
# Forward pass
# --------------------------------------------------------------------------- #
def discriminator_forward(params, imgs, t_input):
    b = imgs.shape[0]
    # single layout change at the module boundary: NCHW -> channel-first CBHW (bf16)
    x = jnp.transpose(imgs, (1, 0, 2, 3)).astype(jnp.bfloat16)
    x = fused_conv_act(x, params["conv1_w"], 4, 2, 1)
    x = fused_conv_act(x, params["conv2_w"], 4, 2, 1, bn=(params["bn1_g"], params["bn1_b"]))
    x = fused_conv_act(x, params["conv3_w"], 4, 2, 1, bn=(params["bn2_g"], params["bn2_b"]))
    y = fused_tail(x, params, t_input)                             # (1, B) f32
    return y.T.reshape(b, 1, 1, 1)                                 # NCHW (B, 1, 1, 1)


# --------------------------------------------------------------------------- #
# Pure-JAX reference (f32) for numerical sanity check
# --------------------------------------------------------------------------- #
def ref_forward(params, imgs, t_input):
    def conv(x, w, stride, pad):
        return lax.conv_general_dilated(
            x, w, (stride, stride), [(pad, pad), (pad, pad)],
            dimension_numbers=("NCHW", "OIHW", "NCHW"))

    def lrelu(x):
        return jnp.where(x >= 0.0, x, 0.2 * x)

    def bn(x, g, bta, eps=1e-5):
        mean = x.mean(axis=(0, 2, 3), keepdims=True)
        var = x.var(axis=(0, 2, 3), keepdims=True)
        return (x - mean) / jnp.sqrt(var + eps) * g.reshape(1, -1, 1, 1) + bta.reshape(1, -1, 1, 1)

    out = lrelu(conv(imgs, params["conv1_w"], 2, 1))
    out = lrelu(bn(conv(out, params["conv2_w"], 2, 1), params["bn1_g"], params["bn1_b"]))
    out = lrelu(bn(conv(out, params["conv3_w"], 2, 1), params["bn2_g"], params["bn2_b"]))
    out = lrelu(bn(conv(out, params["conv4_w"], 2, 1), params["bn3_g"], params["bn3_b"]))
    t = lrelu(t_input @ params["lin_w"].T + params["lin_b"])
    t = t.reshape(imgs.shape[0], -1, 4, 4)
    cat = jnp.concatenate([out, t], axis=1)
    return jax.nn.sigmoid(conv(cat, params["conv5_w"], 1, 0))


# --------------------------------------------------------------------------- #
# Main
# --------------------------------------------------------------------------- #
if __name__ == "__main__":
    # The linear -> reshape(B, -1, 4, 4) + conv5(k=4, p=0) path structurally
    # forces 64x64 inputs and t_out = 16; keep everything else small.
    B, nc, ndf, t_in, t_out = 2, 3, 8, 32, 16
    H = W = 64

    key = jax.random.PRNGKey(0)
    keys = jax.random.split(key, 12)

    def winit(k, shape, std=0.02):
        return (std * jax.random.normal(k, shape)).astype(jnp.float32)

    params = {
        "conv1_w": winit(keys[0], (ndf, nc, 4, 4)),
        "conv2_w": winit(keys[1], (ndf * 2, ndf, 4, 4)),
        "conv3_w": winit(keys[2], (ndf * 4, ndf * 2, 4, 4)),
        "conv4_w": winit(keys[3], (ndf * 8, ndf * 4, 4, 4)),
        "conv5_w": winit(keys[4], (1, ndf * 8 + 1, 4, 4)),
        "lin_w":   winit(keys[5], (t_out, t_in), std=0.1),
        "lin_b":   winit(keys[6], (t_out,), std=0.1),
        "bn1_g":   (1.0 + 0.02 * jax.random.normal(keys[7], (ndf * 2,))).astype(jnp.float32),
        "bn1_b":   jnp.zeros((ndf * 2,), jnp.float32),
        "bn2_g":   (1.0 + 0.02 * jax.random.normal(keys[8], (ndf * 4,))).astype(jnp.float32),
        "bn2_b":   jnp.zeros((ndf * 4,), jnp.float32),
        "bn3_g":   (1.0 + 0.02 * jax.random.normal(keys[9], (ndf * 8,))).astype(jnp.float32),
        "bn3_b":   jnp.zeros((ndf * 8,), jnp.float32),
    }

    imgs = jax.random.normal(keys[10], (B, nc, H, W), dtype=jnp.float32)
    t_input = jax.random.normal(keys[11], (B, t_in), dtype=jnp.float32)

    fwd = jax.jit(discriminator_forward)
    out = jax.block_until_ready(fwd(params, imgs, t_input))
    assert out.shape == (B, 1, 1, 1), out.shape

    # Tolerance covers bf16 MXU operands / bf16 inter-layer activations across
    # four conv layers (f32 accumulation; BN, activations and the tail in f32).
    ref = jax.block_until_ready(ref_forward(params, imgs, t_input))
    assert jnp.allclose(out, ref, rtol=2e-2, atol=2e-2), (out, ref)

    print("KERNEL_OK")
</pallas_src>

<mosaic_0001>
module attributes {stable_mosaic.version = 11 : i64} {
  func.func @_conv_lrelu_kernel(%arg0: memref<8x48xbf16, #tpu.memory_space<vmem>>, %arg1: memref<48x2048xbf16, #tpu.memory_space<vmem>>, %arg2: memref<8x2048xbf16, #tpu.memory_space<vmem>>) attributes {dimension_semantics = [], scalar_prefetch = 0 : i64, scratch_operands = 0 : i64, tpu.core_type = #tpu.core_type<tc>} {
    %c0 = arith.constant 0 : index
    %c0_0 = arith.constant 0 : index
    %0 = vector.load %arg0[%c0, %c0_0] : memref<8x48xbf16, #tpu.memory_space<vmem>>, vector<8x48xbf16>
    %c0_1 = arith.constant 0 : index
    %c0_2 = arith.constant 0 : index
    %1 = vector.load %arg1[%c0_1, %c0_2] : memref<48x2048xbf16, #tpu.memory_space<vmem>>, vector<48x2048xbf16>
    %cst = arith.constant dense<0.000000e+00> : vector<8x2048xf32>
    %2 = tpu.matmul %0, %1, %cst {dimension_numbers = #tpu.dot_dimension_numbers<[1], [0], [0], [1], [0, 0, 1, 1], [], []>} : vector<8x48xbf16>, vector<48x2048xbf16>, vector<8x2048xf32> -> vector<8x2048xf32>
    %cst_3 = arith.constant 2.000000e-01 : f32
    %3 = vector.broadcast %cst_3 : f32 to vector<8x2048xf32>
    %4 = arith.mulf %3, %2 : vector<8x2048xf32>
    %5 = arith.maximumf %2, %4 : vector<8x2048xf32>
    %6 = arith.truncf %5 : vector<8x2048xf32> to vector<8x2048xbf16>
    %c0_4 = arith.constant 0 : index
    %c0_5 = arith.constant 0 : index
    %7 = vector.load %arg2[%c0_4, %c0_5] : memref<8x2048xbf16, #tpu.memory_space<vmem>>, vector<8x2048xbf16>
    tpu.vector_store %arg2[%c0_4, %c0_5], %6 {strides = array<i32>} : memref<8x2048xbf16, #tpu.memory_space<vmem>>, vector<8x2048xbf16>,
    return
  }
}

module attributes {stable_mosaic.version = 11 : i64} {
  func.func @_conv_bn_lrelu_kernel(%arg0: memref<16x128xbf16, #tpu.memory_space<vmem>>, %arg1: memref<128x512xbf16, #tpu.memory_space<vmem>>, %arg2: memref<16x2xf32, #tpu.memory_space<vmem>>, %arg3: memref<16x512xbf16, #tpu.memory_space<vmem>>) attributes {dimension_semantics = [], scalar_prefetch = 0 : i64, scratch_operands = 0 : i64, tpu.core_type = #tpu.core_type<tc>} {
    %c0 = arith.constant 0 : index
    %c0_0 = arith.constant 0 : index
    %0 = vector.load %arg0[%c0, %c0_0] : memref<16x128xbf16, #tpu.memory_space<vmem>>, vector<16x128xbf16>
    %c0_1 = arith.constant 0 : index
    %c0_2 = arith.constant 0 : index
    %1 = vector.load %arg1[%c0_1, %c0_2] : memref<128x512xbf16, #tpu.memory_space<vmem>>, vector<128x512xbf16>
    %cst = arith.constant dense<0.000000e+00> : vector<16x512xf32>
    %2 = tpu.matmul %0, %1, %cst {dimension_numbers = #tpu.dot_dimension_numbers<[1], [0], [0], [1], [0, 0, 1, 1], [], []>} : vector<16x128xbf16>, vector<128x512xbf16>, vector<16x512xf32> -> vector<16x512xf32>
    %c0_3 = arith.constant 0 : index
    %c0_4 = arith.constant 0 : index
    %3 = vector.load %arg2[%c0_3, %c0_4] : memref<16x2xf32, #tpu.memory_space<vmem>>, vector<16x2xf32>
    %cst_5 = arith.constant dense<0.000000e+00> : vector<16xf32>
    %4 = vector.multi_reduction <add>, %2, %cst_5 [1] : vector<16x512xf32> to vector<16xf32>
    %5 = vector.shape_cast %4 : vector<16xf32> to vector<16x1xf32>
    %cst_6 = arith.constant 0.001953125 : f32
    %6 = vector.broadcast %cst_6 : f32 to vector<16x1xf32>
    %7 = arith.mulf %5, %6 : vector<16x1xf32>
    %8 = vector.broadcast %7 : vector<16x1xf32> to vector<16x512xf32>
    %9 = arith.subf %2, %8 : vector<16x512xf32>
    %10 = arith.mulf %9, %9 : vector<16x512xf32>
    %cst_7 = arith.constant dense<0.000000e+00> : vector<16xf32>
    %11 = vector.multi_reduction <add>, %10, %cst_7 [1] : vector<16x512xf32> to vector<16xf32>
    %12 = vector.shape_cast %11 : vector<16xf32> to vector<16x1xf32>
    %cst_8 = arith.constant 0.001953125 : f32
    %13 = vector.broadcast %cst_8 : f32 to vector<16x1xf32>
    %14 = arith.mulf %12, %13 : vector<16x1xf32>
    %15 = vector.extract_strided_slice %3 {offsets = [0, 0], sizes = [16, 1], strides = [1, 1]} : vector<16x2xf32> to vector<16x1xf32>
    %cst_9 = arith.constant 9.99999974E-6 : f32
    %16 = vector.broadcast %cst_9 : f32 to vector<16x1xf32>
    %17 = arith.addf %14, %16 : vector<16x1xf32>
    %18 = math.rsqrt %17 : vector<16x1xf32>
    %19 = arith.mulf %15, %18 : vector<16x1xf32>
    %20 = vector.broadcast %19 : vector<16x1xf32> to vector<16x512xf32>
    %21 = arith.mulf %9, %20 : vector<16x512xf32>
    %22 = vector.extract_strided_slice %3 {offsets = [0, 1], sizes = [16, 1], strides = [1, 1]} : vector<16x2xf32> to vector<16x1xf32>
    %23 = vector.broadcast %22 : vector<16x1xf32> to vector<16x512xf32>
    %24 = arith.addf %21, %23 : vector<16x512xf32>
    %cst_10 = arith.constant 2.000000e-01 : f32
    %25 = vector.broadcast %cst_10 : f32 to vector<16x512xf32>
    %26 = arith.mulf %25, %24 : vector<16x512xf32>
    %27 = arith.maximumf %24, %26 : vector<16x512xf32>
    %28 = arith.truncf %27 : vector<16x512xf32> to vector<16x512xbf16>
    %c0_11 = arith.constant 0 : index
    %c0_12 = arith.constant 0 : index
    %29 = vector.load %arg3[%c0_11, %c0_12] : memref<16x512xbf16, #tpu.memory_space<vmem>>, vector<16x512xbf16>
    tpu.vector_store %arg3[%c0_11, %c0_12], %28 {strides = array<i32>} : memref<16x512xbf16, #tpu.memory_space<vmem>>, vector<16x512xbf16>,
    return
  }
}

module attributes {stable_mosaic.version = 11 : i64} {
  func.func @_conv_bn_lrelu_kernel(%arg0: memref<32x256xbf16, #tpu.memory_space<vmem>>, %arg1: memref<256x128xbf16, #tpu.memory_space<vmem>>, %arg2: memref<32x2xf32, #tpu.memory_space<vmem>>, %arg3: memref<32x128xbf16, #tpu.memory_space<vmem>>) attributes {dimension_semantics = [], scalar_prefetch = 0 : i64, scratch_operands = 0 : i64, tpu.core_type = #tpu.core_type<tc>} {
    %c0 = arith.constant 0 : index
    %c0_0 = arith.constant 0 : index
    %0 = vector.load %arg0[%c0, %c0_0] : memref<32x256xbf16, #tpu.memory_space<vmem>>, vector<32x256xbf16>
    %c0_1 = arith.constant 0 : index
    %c0_2 = arith.constant 0 : index
    %1 = vector.load %arg1[%c0_1, %c0_2] : memref<256x128xbf16, #tpu.memory_space<vmem>>, vector<256x128xbf16>
    %cst = arith.constant dense<0.000000e+00> : vector<32x128xf32>
    %2 = tpu.matmul %0, %1, %cst {dimension_numbers = #tpu.dot_dimension_numbers<[1], [0], [0], [1], [0, 0, 1, 1], [], []>} : vector<32x256xbf16>, vector<256x128xbf16>, vector<32x128xf32> -> vector<32x128xf32>
    %c0_3 = arith.constant 0 : index
    %c0_4 = arith.constant 0 : index
    %3 = vector.load %arg2[%c0_3, %c0_4] : memref<32x2xf32, #tpu.memory_space<vmem>>, vector<32x2xf32>
    %cst_5 = arith.constant dense<0.000000e+00> : vector<32xf32>
    %4 = vector.multi_reduction <add>, %2, %cst_5 [1] : vector<32x128xf32> to vector<32xf32>
    %5 = vector.shape_cast %4 : vector<32xf32> to vector<32x1xf32>
    %cst_6 = arith.constant 7.812500e-03 : f32
    %6 = vector.broadcast %cst_6 : f32 to vector<32x1xf32>
    %7 = arith.mulf %5, %6 : vector<32x1xf32>
    %8 = vector.broadcast %7 : vector<32x1xf32> to vector<32x128xf32>
    %9 = arith.subf %2, %8 : vector<32x128xf32>
    %10 = arith.mulf %9, %9 : vector<32x128xf32>
    %cst_7 = arith.constant dense<0.000000e+00> : vector<32xf32>
    %11 = vector.multi_reduction <add>, %10, %cst_7 [1] : vector<32x128xf32> to vector<32xf32>
    %12 = vector.shape_cast %11 : vector<32xf32> to vector<32x1xf32>
    %cst_8 = arith.constant 7.812500e-03 : f32
    %13 = vector.broadcast %cst_8 : f32 to vector<32x1xf32>
    %14 = arith.mulf %12, %13 : vector<32x1xf32>
    %15 = vector.extract_strided_slice %3 {offsets = [0, 0], sizes = [32, 1], strides = [1, 1]} : vector<32x2xf32> to vector<32x1xf32>
    %cst_9 = arith.constant 9.99999974E-6 : f32
    %16 = vector.broadcast %cst_9 : f32 to vector<32x1xf32>
    %17 = arith.addf %14, %16 : vector<32x1xf32>
    %18 = math.rsqrt %17 : vector<32x1xf32>
    %19 = arith.mulf %15, %18 : vector<32x1xf32>
    %20 = vector.broadcast %19 : vector<32x1xf32> to vector<32x128xf32>
    %21 = arith.mulf %9, %20 : vector<32x128xf32>
    %22 = vector.extract_strided_slice %3 {offsets = [0, 1], sizes = [32, 1], strides = [1, 1]} : vector<32x2xf32> to vector<32x1xf32>
    %23 = vector.broadcast %22 : vector<32x1xf32> to vector<32x128xf32>
    %24 = arith.addf %21, %23 : vector<32x128xf32>
    %cst_10 = arith.constant 2.000000e-01 : f32
    %25 = vector.broadcast %cst_10 : f32 to vector<32x128xf32>
    %26 = arith.mulf %25, %24 : vector<32x128xf32>
    %27 = arith.maximumf %24, %26 : vector<32x128xf32>
    %28 = arith.truncf %27 : vector<32x128xf32> to vector<32x128xbf16>
    %c0_11 = arith.constant 0 : index
    %c0_12 = arith.constant 0 : index
    %29 = vector.load %arg3[%c0_11, %c0_12] : memref<32x128xbf16, #tpu.memory_space<vmem>>, vector<32x128xbf16>
    tpu.vector_store %arg3[%c0_11, %c0_12], %28 {strides = array<i32>} : memref<32x128xbf16, #tpu.memory_space<vmem>>, vector<32x128xbf16>,
    return
  }
}

module attributes {stable_mosaic.version = 11 : i64} {
  func.func @_tail_kernel(%arg0: memref<64x512xbf16, #tpu.memory_space<vmem>>, %arg1: memref<512x32xbf16, #tpu.memory_space<vmem>>, %arg2: memref<64x2xf32, #tpu.memory_space<vmem>>, %arg3: memref<16x32xf32, #tpu.memory_space<vmem>>, %arg4: memref<16x1xf32, #tpu.memory_space<vmem>>, %arg5: memref<32x2xf32, #tpu.memory_space<vmem>>, %arg6: memref<64x32xf32, #tpu.memory_space<vmem>>, %arg7: memref<16x1xf32, #tpu.memory_space<vmem>>, %arg8: memref<32x2xf32, #tpu.memory_space<vmem>>, %arg9: memref<1x2xf32, #tpu.memory_space<vmem>>) attributes {dimension_semantics = [], scalar_prefetch = 0 : i64, scratch_operands = 0 : i64, tpu.core_type = #tpu.core_type<tc>} {
    %c0 = arith.constant 0 : index
    %c0_0 = arith.constant 0 : index
    %0 = vector.load %arg0[%c0, %c0_0] : memref<64x512xbf16, #tpu.memory_space<vmem>>, vector<64x512xbf16>
    %c0_1 = arith.constant 0 : index
    %c0_2 = arith.constant 0 : index
    %1 = vector.load %arg1[%c0_1, %c0_2] : memref<512x32xbf16, #tpu.memory_space<vmem>>, vector<512x32xbf16>
    %cst = arith.constant dense<0.000000e+00> : vector<64x32xf32>
    %2 = tpu.matmul %0, %1, %cst {dimension_numbers = #tpu.dot_dimension_numbers<[1], [0], [0], [1], [0, 0, 1, 1], [], []>} : vector<64x512xbf16>, vector<512x32xbf16>, vector<64x32xf32> -> vector<64x32xf32>
    %c0_3 = arith.constant 0 : index
    %c0_4 = arith.constant 0 : index
    %3 = vector.load %arg2[%c0_3, %c0_4] : memref<64x2xf32, #tpu.memory_space<vmem>>, vector<64x2xf32>
    %cst_5 = arith.constant dense<0.000000e+00> : vector<64xf32>
    %4 = vector.multi_reduction <add>, %2, %cst_5 [1] : vector<64x32xf32> to vector<64xf32>
    %5 = vector.shape_cast %4 : vector<64xf32> to vector<64x1xf32>
    %cst_6 = arith.constant 3.125000e-02 : f32
    %6 = vector.broadcast %cst_6 : f32 to vector<64x1xf32>
    %7 = arith.mulf %5, %6 : vector<64x1xf32>
    %8 = vector.broadcast %7 : vector<64x1xf32> to vector<64x32xf32>
    %9 = arith.subf %2, %8 : vector<64x32xf32>
    %10 = arith.mulf %9, %9 : vector<64x32xf32>
    %cst_7 = arith.constant dense<0.000000e+00> : vector<64xf32>
    %11 = vector.multi_reduction <add>, %10, %cst_7 [1] : vector<64x32xf32> to vector<64xf32>
    %12 = vector.shape_cast %11 : vector<64xf32> to vector<64x1xf32>
    %cst_8 = arith.constant 3.125000e-02 : f32
    %13 = vector.broadcast %cst_8 : f32 to vector<64x1xf32>
    %14 = arith.mulf %12, %13 : vector<64x1xf32>
    %15 = vector.extract_strided_slice %3 {offsets = [0, 0], sizes = [64, 1], strides = [1, 1]} : vector<64x2xf32> to vector<64x1xf32>
    %cst_9 = arith.constant 9.99999974E-6 : f32
    %16 = vector.broadcast %cst_9 : f32 to vector<64x1xf32>
    %17 = arith.addf %14, %16 : vector<64x1xf32>
    %18 = math.rsqrt %17 : vector<64x1xf32>
    %19 = arith.mulf %15, %18 : vector<64x1xf32>
    %20 = vector.broadcast %19 : vector<64x1xf32> to vector<64x32xf32>
    %21 = arith.mulf %9, %20 : vector<64x32xf32>
    %22 = vector.extract_strided_slice %3 {offsets = [0, 1], sizes = [64, 1], strides = [1, 1]} : vector<64x2xf32> to vector<64x1xf32>
    %23 = vector.broadcast %22 : vector<64x1xf32> to vector<64x32xf32>
    %24 = arith.addf %21, %23 : vector<64x32xf32>
    %cst_10 = arith.constant 2.000000e-01 : f32
    %25 = vector.broadcast %cst_10 : f32 to vector<64x32xf32>
    %26 = arith.mulf %25, %24 : vector<64x32xf32>
    %27 = arith.maximumf %24, %26 : vector<64x32xf32>
    %c0_11 = arith.constant 0 : index
    %c0_12 = arith.constant 0 : index
    %28 = vector.load %arg3[%c0_11, %c0_12] : memref<16x32xf32, #tpu.memory_space<vmem>>, vector<16x32xf32>
    %c0_13 = arith.constant 0 : index
    %c0_14 = arith.constant 0 : index
    %29 = vector.load %arg5[%c0_13, %c0_14] : memref<32x2xf32, #tpu.memory_space<vmem>>, vector<32x2xf32>
    %cst_15 = arith.constant dense<0.000000e+00> : vector<16x2xf32>
    %30 = tpu.matmul %28, %29, %cst_15 {dimension_numbers = #tpu.dot_dimension_numbers<[1], [0], [0], [1], [0, 0, 1, 1], [], []>} : vector<16x32xf32>, vector<32x2xf32>, vector<16x2xf32> -> vector<16x2xf32>
    %c0_16 = arith.constant 0 : index
    %c0_17 = arith.constant 0 : index
    %31 = vector.load %arg4[%c0_16, %c0_17] : memref<16x1xf32, #tpu.memory_space<vmem>>, vector<16x1xf32>
    %32 = vector.broadcast %31 : vector<16x1xf32> to vector<16x2xf32>
    %33 = arith.addf %30, %32 : vector<16x2xf32>
    %cst_18 = arith.constant 2.000000e-01 : f32
    %34 = vector.broadcast %cst_18 : f32 to vector<16x2xf32>
    %35 = arith.mulf %34, %33 : vector<16x2xf32>
    %36 = arith.maximumf %33, %35 : vector<16x2xf32>
    %c0_19 = arith.constant 0 : index
    %c0_20 = arith.constant 0 : index
    %37 = vector.load %arg6[%c0_19, %c0_20] : memref<64x32xf32, #tpu.memory_space<vmem>>, vector<64x32xf32>
    %38 = arith.mulf %27, %37 : vector<64x32xf32>
    %cst_21 = arith.constant dense<0.000000e+00> : vector<32xf32>
    %39 = vector.multi_reduction <add>, %38, %cst_21 [0] : vector<64x32xf32> to vector<32xf32>
    %40 = vector.shape_cast %39 : vector<32xf32> to vector<1x32xf32>
    %c0_22 = arith.constant 0 : index
    %c0_23 = arith.constant 0 : index
    %41 = vector.load %arg8[%c0_22, %c0_23] : memref<32x2xf32, #tpu.memory_space<vmem>>, vector<32x2xf32>
    %cst_24 = arith.constant dense<0.000000e+00> : vector<1x2xf32>
    %42 = tpu.matmul %40, %41, %cst_24 {dimension_numbers = #tpu.dot_dimension_numbers<[1], [0], [0], [1], [0, 0, 1, 1], [], []>} : vector<1x32xf32>, vector<32x2xf32>, vector<1x2xf32> -> vector<1x2xf32>
    %c0_25 = arith.constant 0 : index
    %c0_26 = arith.constant 0 : index
    %43 = vector.load %arg7[%c0_25, %c0_26] : memref<16x1xf32, #tpu.memory_space<vmem>>, vector<16x1xf32>
    %44 = vector.broadcast %43 : vector<16x1xf32> to vector<16x2xf32>
    %45 = arith.mulf %44, %36 : vector<16x2xf32>
    %cst_27 = arith.constant dense<0.000000e+00> : vector<2xf32>
    %46 = vector.multi_reduction <add>, %45, %cst_27 [0] : vector<16x2xf32> to vector<2xf32>
    %47 = vector.shape_cast %46 : vector<2xf32> to vector<1x2xf32>
    %48 = arith.addf %42, %47 : vector<1x2xf32>
    %cst_28 = arith.constant 0.000000e+00 : f32
    %49 = vector.broadcast %cst_28 : f32 to vector<1x2xf32>
    %50 = arith.subf %49, %48 : vector<1x2xf32>
    %51 = math.exp %50 : vector<1x2xf32>
    %cst_29 = arith.constant 1.000000e+00 : f32
    %52 = vector.broadcast %cst_29 : f32 to vector<1x2xf32>
    %53 = arith.addf %52, %51 : vector<1x2xf32>
    %cst_30 = arith.constant 1.000000e+00 : f32
    %54 = vector.broadcast %cst_30 : f32 to vector<1x2xf32>
    %55 = arith.divf %54, %53 : vector<1x2xf32>
    %c0_31 = arith.constant 0 : index
    %c0_32 = arith.constant 0 : index
    %56 = vector.load %arg9[%c0_31, %c0_32] : memref<1x2xf32, #tpu.memory_space<vmem>>, vector<1x2xf32>
    tpu.vector_store %arg9[%c0_31, %c0_32], %55 {strides = array<i32>} : memref<1x2xf32, #tpu.memory_space<vmem>>, vector<1x2xf32>,
    return
  }
}

</mosaic_0001>

<bundles_post_ra>
// kernel: discriminator_forward.4
= control target key start
LH: loop header
LB: loop body
LE: loop exit
PB: predicated region body
PF: predicated region fallthrough
CT: control target
= control target key end

     0   :  { %v814_v3 = vmov 0   ;;  %vm301_vm0 = vcmask 392192   ;;  %s1027_s1 = inlined_call_operand.vmem [shape: bf16[48,2048], index: 1, kind: input, shape index: {}]   ;;  %s1028_s0 = inlined_call_operand.vmem [shape: bf16[8,48], index: 0, kind: input, shape index: {}]   ;;  %s1029_s2 = inlined_call_operand.vmem [shape: bf16[8,2048], index: 2, kind: output, shape index: {}]  }
   0x1   :  { %v13_v0 = vld [vmem:[%s1027_s1] sm:$0xff]  ;;  %v14_v2 = vld [vmem:[%s1027_s1 + $0x8] sm:$0xff]  ;;  %337 = vmatprep.mubr.bf16.mxu0 %v814_v3  ;;  %378 = vmatprep.mubr.bf16.mxu1 %v814_v3  ;;  %v15_v23 = vld [vmem:[%s1027_s1 + $0x10] sm:$0xff] }
   0x2   :  { %v21_v1 = vld [vmem:[%s1027_s1 + $0x40] sm:$0xff]  ;;  %v22_v5 = vld [vmem:[%s1027_s1 + $0x48] sm:$0xff]  ;;  %v23_v24 = vld [vmem:[%s1027_s1 + $0x50] sm:$0xff] }
   0x3   :  { %v742_v4 = vcombine.high %v13_v0, %v21_v1  ;;  %v741_v6 = vcombine.low %v13_v0, %v21_v1  ;;  %v29_v7 = vld [vmem:[%s1027_s1 + $0x80] sm:$0xff]  ;;  %v744_v9 = vcombine.high %v14_v2, %v22_v5  ;;  %v743_v10 = vcombine.low %v14_v2, %v22_v5  ;;  %v30_v12 = vld [vmem:[%s1027_s1 + $0x88] sm:$0xff]  ;;  %v16_v25 = vld [vmem:[%s1027_s1 + $0x18] sm:$0xff] }
   0x4   :  { %v37_v8 = vld [vmem:[%s1027_s1 + $0xc0] sm:$0xff]  ;;  %v38_v13 = vld [vmem:[%s1027_s1 + $0xc8] sm:$0xff]  ;;  %v24_v26 = vld [vmem:[%s1027_s1 + $0x58] sm:$0xff]  ;;  %v746_v29 = vcombine.high %v15_v23, %v23_v24  ;;  %v745_v36 = vcombine.low %v15_v23, %v23_v24 }
   0x5   :  { %v758_v11 = vcombine.high %v29_v7, %v37_v8  ;;  %v45_v14 = vld [vmem:[%s1027_s1 + $0x100] sm:$0xff]  ;;  %305 = vmatprep.subr.bf16.mxu0 %v742_v4  ;;  %v760_v15 = vcombine.high %v30_v12, %v38_v13  ;;  %v46_v17 = vld [vmem:[%s1027_s1 + $0x108] sm:$0xff]  ;;  %346 = vmatprep.subr.bf16.mxu1 %v744_v9  ;;  %v757_v19 = vcombine.low %v29_v7, %v37_v8  ;;  %v31_v31 = vld [vmem:[%s1027_s1 + $0x90] sm:$0xff] }
   0x6   :  { %v53_v16 = vld [vmem:[%s1027_s1 + $0x140] sm:$0xff]  ;;  %v54_v18 = vld [vmem:[%s1027_s1 + $0x148] sm:$0xff]  ;;  %306 = vmatpush1.bf16.msra.mxu0 %v741_v6  ;;  %347 = vmatpush1.bf16.msra.mxu1 %v743_v10  ;;  %v759_v20 = vcombine.low %v30_v12, %v38_v13  ;;  %v748_v30 = vcombine.high %v16_v25, %v24_v26  ;;  %v39_v32 = vld [vmem:[%s1027_s1 + $0xd0] sm:$0xff]  ;;  %v747_v37 = vcombine.low %v16_v25, %v24_v26 }
   0x7   :  { %307 = vmatprep.subr.bf16.mxu0 %v758_v11  ;;  %v774_v21 = vcombine.high %v45_v14, %v53_v16  ;;  %348 = vmatprep.subr.bf16.mxu1 %v760_v15  ;;  %v776_v22 = vcombine.high %v46_v17, %v54_v18  ;;  %v773_v27 = vcombine.low %v45_v14, %v53_v16  ;;  %v32_v33 = vld [vmem:[%s1027_s1 + $0x98] sm:$0xff]  ;;  %v895_v35 = vld [vmem:[%s1028_s0] sm:$0xf]  ;;  %v47_v40 = vld [vmem:[%s1027_s1 + $0x110] sm:$0xff] }
   0x8   :  { %v775_v28 = vcombine.low %v46_v17, %v54_v18  ;;  %v40_v34 = vld [vmem:[%s1027_s1 + $0xd8] sm:$0xff]  ;;  %v762_v38 = vcombine.high %v31_v31, %v39_v32  ;;  %v55_v41 = vld [vmem:[%s1027_s1 + $0x150] sm:$0xff]  ;;  %v761_v44 = vcombine.low %v31_v31, %v39_v32  ;;  %v17_v48 = vld [vmem:[%s1027_s1 + $0x20] sm:$0xff] }
   0x9   :  { %v764_v39 = vcombine.high %v32_v33, %v40_v34  ;;  %v48_v42 = vld [vmem:[%s1027_s1 + $0x118] sm:$0xff]  ;;  %v763_v45 = vcombine.low %v32_v33, %v40_v34  ;;  %v778_v46 = vcombine.high %v47_v40, %v55_v41  ;;  %v25_v49 = vld [vmem:[%s1027_s1 + $0x60] sm:$0xff]  ;;  %v18_v50 = vld [vmem:[%s1027_s1 + $0x28] sm:$0xff]  ;;  %v777_v52 = vcombine.low %v47_v40, %v55_v41 }
   0xa   :  { %308 = vmatpush1.bf16.msra.mxu0 %v757_v19  ;;  %349 = vmatpush1.bf16.msra.mxu1 %v759_v20  ;;  %v56_v43 = vld [vmem:[%s1027_s1 + $0x158] sm:$0xff]  ;;  %v26_v51 = vld [vmem:[%s1027_s1 + $0x68] sm:$0xff]  ;;  %v750_v54 = vcombine.high %v17_v48, %v25_v49  ;;  %v33_v56 = vld [vmem:[%s1027_s1 + $0xa0] sm:$0xff]  ;;  %v749_v60 = vcombine.low %v17_v48, %v25_v49 }
   0xb   :  { %309 = vmatprep.subr.bf16.mxu0 %v774_v21  ;;  %350 = vmatprep.subr.bf16.mxu1 %v776_v22  ;;  %v780_v47 = vcombine.high %v48_v42, %v56_v43  ;;  %v779_v53 = vcombine.low %v48_v42, %v56_v43  ;;  %v752_v55 = vcombine.high %v18_v50, %v26_v51  ;;  %v41_v57 = vld [vmem:[%s1027_s1 + $0xe0] sm:$0xff]  ;;  %v34_v58 = vld [vmem:[%s1027_s1 + $0xa8] sm:$0xff]  ;;  %v19_v9 = vld [vmem:[%s1027_s1 + $0x30] sm:$0xff] }
   0xc   :  { %v42_v59 = vld [vmem:[%s1027_s1 + $0xe8] sm:$0xff]  ;;  %v751_v61 = vcombine.low %v18_v50, %v26_v51  ;;  %v766_v62 = vcombine.high %v33_v56, %v41_v57  ;;  %v49_v0 = vld [vmem:[%s1027_s1 + $0x120] sm:$0xff]  ;;  %v765_v5 = vcombine.low %v33_v56, %v41_v57  ;;  %v27_v10 = vld [vmem:[%s1027_s1 + $0x70] sm:$0xff] }
   0xd   :  { %v768_v63 = vcombine.high %v34_v58, %v42_v59  ;;  %v57_v1 = vld [vmem:[%s1027_s1 + $0x160] sm:$0xff]  ;;  %v50_v2 = vld [vmem:[%s1027_s1 + $0x128] sm:$0xff]  ;;  %v767_v6 = vcombine.low %v34_v58, %v42_v59  ;;  %v20_v11 = vld [vmem:[%s1027_s1 + $0x38] sm:$0xff]  ;;  %v754_v15 = vcombine.high %v19_v9, %v27_v10  ;;  %v753_v21 = vcombine.low %v19_v9, %v27_v10 }
   0xe   :  { %310 = vmatpush1.bf16.msra.mxu0 %v773_v27  ;;  %351 = vmatpush1.bf16.msra.mxu1 %v775_v28  ;;  %v58_v4 = vld [vmem:[%s1027_s1 + $0x168] sm:$0xff]  ;;  %v782_v7 = vcombine.high %v49_v0, %v57_v1  ;;  %v28_v12 = vld [vmem:[%s1027_s1 + $0x78] sm:$0xff]  ;;  %v781_v13 = vcombine.low %v49_v0, %v57_v1  ;;  %v35_v17 = vld [vmem:[%s1027_s1 + $0xb0] sm:$0xff] }
   0xf   :  { %387 = vmatprep.subr.bf16.mxu0 %v746_v29  ;;  %428 = vmatprep.subr.bf16.mxu1 %v748_v30  ;;  %v784_v8 = vcombine.high %v50_v2, %v58_v4  ;;  %v783_v14 = vcombine.low %v50_v2, %v58_v4  ;;  %v756_v16 = vcombine.high %v20_v11, %v28_v12  ;;  %v43_v18 = vld [vmem:[%s1027_s1 + $0xf0] sm:$0xff]  ;;  %v36_v19 = vld [vmem:[%s1027_s1 + $0xb8] sm:$0xff] }
  0x10   :  { %v44_v20 = vld [vmem:[%s1027_s1 + $0xf8] sm:$0xff]  ;;  %v755_v22 = vcombine.low %v20_v11, %v28_v12  ;;  %v770_v23 = vcombine.high %v35_v17, %v43_v18  ;;  %v51_v25 = vld [vmem:[%s1027_s1 + $0x130] sm:$0xff]  ;;  %v769_v29 = vcombine.low %v35_v17, %v43_v18 }
  0x11   :  { %789 = vmatmul.mubr.msk.bf16.vlgmr.msra.gmra.mrb[0].mxu0 %vm301_vm0, %v895_v35  ;;  %790 = vmatmul.mubr.msk.bf16.vlgmr.msra.gmra.mrb[0].mxu1 %vm301_vm0, %v895_v35  ;;  %v772_v24 = vcombine.high %v36_v19, %v44_v20  ;;  %v59_v26 = vld [vmem:[%s1027_s1 + $0x170] sm:$0xff]  ;;  %v52_v27 = vld [vmem:[%s1027_s1 + $0x138] sm:$0xff]  ;;  %v771_v30 = vcombine.low %v36_v19, %v44_v20 }
  0x12   :  { %388 = vmatpush1.bf16.msra.mxu0 %v745_v36  ;;  %429 = vmatpush1.bf16.msra.mxu1 %v747_v37  ;;  %v60_v28 = vld [vmem:[%s1027_s1 + $0x178] sm:$0xff]  ;;  %v786_v31 = vcombine.high %v51_v25, %v59_v26  ;;  %v785_v33 = vcombine.low %v51_v25, %v59_v26 }
  0x13   :  { %389 = vmatprep.subr.bf16.mxu0 %v762_v38  ;;  %430 = vmatprep.subr.bf16.mxu1 %v764_v39  ;;  %v788_v32 = vcombine.high %v52_v27, %v60_v28  ;;  %v787_v34 = vcombine.low %v52_v27, %v60_v28 }
  0x14   :  { %419 = vmatprep.mubr.bf16.mxu0 %v814_v3  ;;  %460 = vmatprep.mubr.bf16.mxu1 %v814_v3 }
  0x16   :  { %390 = vmatpush1.bf16.msra.mxu0 %v761_v44  ;;  %431 = vmatpush1.bf16.msra.mxu1 %v763_v45 }
  0x17   :  { %391 = vmatprep.subr.bf16.mxu0 %v778_v46  ;;  %432 = vmatprep.subr.bf16.mxu1 %v780_v47 }
  0x1a   :  { %392 = vmatpush1.bf16.msra.mxu0 %v777_v52  ;;  %433 = vmatpush1.bf16.msra.mxu1 %v779_v53 }
  0x1b   :  { %469 = vmatprep.subr.bf16.mxu0 %v750_v54  ;;  %510 = vmatprep.subr.bf16.mxu1 %v752_v55 }
  0x1d   :  { %791 = vmatmul.mubr.msk.bf16.vlgmr.msra.gmra.mrb[4].mxu0 %vm301_vm0, %v895_v35  ;;  %792 = vmatmul.mubr.msk.bf16.vlgmr.msra.gmra.mrb[4].mxu1 %vm301_vm0, %v895_v35 }
  0x1e   :  { %470 = vmatpush1.bf16.msra.mxu0 %v749_v60  ;;  %511 = vmatpush1.bf16.msra.mxu1 %v751_v61 }
  0x1f   :  { %471 = vmatprep.subr.bf16.mxu0 %v766_v62  ;;  %512 = vmatprep.subr.bf16.mxu1 %v768_v63 }
  0x20   :  { %501 = vmatprep.mubr.bf16.mxu0 %v814_v3  ;;  %542 = vmatprep.mubr.bf16.mxu1 %v814_v3 }
  0x22   :  { %472 = vmatpush1.bf16.msra.mxu0 %v765_v5  ;;  %513 = vmatpush1.bf16.msra.mxu1 %v767_v6 }
  0x23   :  { %473 = vmatprep.subr.bf16.mxu0 %v782_v7  ;;  %514 = vmatprep.subr.bf16.mxu1 %v784_v8 }
  0x26   :  { %474 = vmatpush1.bf16.msra.mxu0 %v781_v13  ;;  %515 = vmatpush1.bf16.msra.mxu1 %v783_v14 }
  0x27   :  { %551 = vmatprep.subr.bf16.mxu0 %v754_v15  ;;  %592 = vmatprep.subr.bf16.mxu1 %v756_v16 }
  0x29   :  { %793 = vmatmul.mubr.msk.bf16.vlgmr.msra.gmra.mrb[8].mxu0 %vm301_vm0, %v895_v35  ;;  %794 = vmatmul.mubr.msk.bf16.vlgmr.msra.gmra.mrb[8].mxu1 %vm301_vm0, %v895_v35 }
  0x2a   :  { %552 = vmatpush1.bf16.msra.mxu0 %v753_v21  ;;  %593 = vmatpush1.bf16.msra.mxu1 %v755_v22 }
  0x2b   :  { %553 = vmatprep.subr.bf16.mxu0 %v770_v23  ;;  %594 = vmatprep.subr.bf16.mxu1 %v772_v24 }
  0x2c   :  { %583 = vmatprep.mubr.bf16.mxu0 %v814_v3  ;;  %624 = vmatprep.mubr.bf16.mxu1 %v814_v3 }
  0x2e   :  { %554 = vmatpush1.bf16.msra.mxu0 %v769_v29  ;;  %595 = vmatpush1.bf16.msra.mxu1 %v771_v30 }
  0x2f   :  { %555 = vmatprep.subr.bf16.mxu0 %v786_v31  ;;  %596 = vmatprep.subr.bf16.mxu1 %v788_v32 }
  0x32   :  { %556 = vmatpush1.bf16.msra.mxu0 %v785_v33  ;;  %597 = vmatpush1.bf16.msra.mxu1 %v787_v34 }
  0x35   :  { %795 = vmatmul.mubr.msk.bf16.vlgmr.msra.gmra.mrb[12].mxu0 %vm301_vm0, %v895_v35  ;;  %796 = vmatmul.mubr.msk.bf16.vlgmr.msra.gmra.mrb[12].mxu1 %vm301_vm0, %v895_v35 }
  0xe4   :  { %v339_v36 = vpop.f32.mrb[0].mxu0  ;;  %v380_v38 = vpop.f32.mrb[0].mxu1 }
  0xe5   :  { %v633_v37 = vmul.f32 0.2, %v339_v36  ;;  %v341_v39 = vpop.f32.mrb[1].mxu0  ;;  %v635_v40 = vmul.f32 0.2, %v380_v38  ;;  %v382_v41 = vpop.f32.mrb[1].mxu1 }
  0xe6   :  { %v634_v3 = vmul.f32 0.2, %v341_v39  ;;  %v343_v42 = vpop.f32.mrb[2].mxu0  ;;  %v636_v44 = vmul.f32 0.2, %v382_v41  ;;  %v384_v45 = vpop.f32.mrb[2].mxu1 }
  0xe7   :  { %v649_v43 = vmax.f32 %v339_v36, %v633_v37  ;;  %v344_v46 = vpop.f32.mrb[3].mxu0  ;;  %v651_v47 = vmax.f32 %v380_v38, %v635_v40  ;;  %v385_v49 = vpop.f32.mrb[3].mxu1 }
  0xe8   :  { %v650_v48 = vmax.f32 %v341_v39, %v634_v3  ;;  %v652_v50 = vmax.f32 %v382_v41, %v636_v44 }
  0xea   :  { %v805_v51 = vpack.c.bf16 %v650_v48, %v649_v43  ;;  %v806_v52 = vpack.c.bf16 %v652_v50, %v651_v47 }
  0xec   :  { %729 = vst [vmem:[%s1029_s2] sm:$0xff] %v805_v51  ;;  %730 = vst [vmem:[%s1029_s2 + $0x8] sm:$0xff] %v806_v52 }
  0xf0   :  { %v421_v35 = vpop.f32.mrb[4].mxu0  ;;  %v462_v54 = vpop.f32.mrb[4].mxu1 }
  0xf1   :  { %v637_v53 = vmul.f32 0.2, %v421_v35  ;;  %v423_v55 = vpop.f32.mrb[5].mxu0  ;;  %v639_v56 = vmul.f32 0.2, %v462_v54  ;;  %v464_v58 = vpop.f32.mrb[5].mxu1 }
  0xf2   :  { %v638_v57 = vmul.f32 0.2, %v423_v55  ;;  %v425_v59 = vpop.f32.mrb[6].mxu0  ;;  %v640_v61 = vmul.f32 0.2, %v464_v58  ;;  %v466_v62 = vpop.f32.mrb[6].mxu1 }
  0xf3   :  { %v653_v60 = vmax.f32 %v421_v35, %v637_v53  ;;  %v426_v63 = vpop.f32.mrb[7].mxu0  ;;  %v655_v0 = vmax.f32 %v462_v54, %v639_v56  ;;  %v467_v2 = vpop.f32.mrb[7].mxu1 }
  0xf4   :  { %v654_v1 = vmax.f32 %v423_v55, %v638_v57  ;;  %v656_v4 = vmax.f32 %v464_v58, %v640_v61 }
  0xf6   :  { %v807_v5 = vpack.c.bf16 %v654_v1, %v653_v60  ;;  %v808_v6 = vpack.c.bf16 %v656_v4, %v655_v0 }
  0xf8   :  { %731 = vst [vmem:[%s1029_s2 + $0x10] sm:$0xff] %v807_v5  ;;  %732 = vst [vmem:[%s1029_s2 + $0x18] sm:$0xff] %v808_v6 }
  0xfc   :  { %v503_v7 = vpop.f32.mrb[8].mxu0  ;;  %v544_v9 = vpop.f32.mrb[8].mxu1 }
  0xfd   :  { %v641_v8 = vmul.f32 0.2, %v503_v7  ;;  %v505_v10 = vpop.f32.mrb[9].mxu0  ;;  %v643_v11 = vmul.f32 0.2, %v544_v9  ;;  %v546_v13 = vpop.f32.mrb[9].mxu1 }
  0xfe   :  { %v642_v12 = vmul.f32 0.2, %v505_v10  ;;  %v507_v14 = vpop.f32.mrb[10].mxu0  ;;  %v644_v16 = vmul.f32 0.2, %v546_v13  ;;  %v548_v17 = vpop.f32.mrb[10].mxu1 }
  0xff   :  { %v657_v15 = vmax.f32 %v503_v7, %v641_v8  ;;  %v508_v18 = vpop.f32.mrb[11].mxu0  ;;  %v659_v19 = vmax.f32 %v544_v9, %v643_v11  ;;  %v549_v21 = vpop.f32.mrb[11].mxu1 }
 0x100   :  { %v658_v20 = vmax.f32 %v505_v10, %v642_v12  ;;  %v660_v22 = vmax.f32 %v546_v13, %v644_v16 }
 0x102   :  { %v809_v23 = vpack.c.bf16 %v658_v20, %v657_v15  ;;  %v810_v24 = vpack.c.bf16 %v660_v22, %v659_v19 }
 0x104   :  { %733 = vst [vmem:[%s1029_s2 + $0x20] sm:$0xff] %v809_v23  ;;  %734 = vst [vmem:[%s1029_s2 + $0x28] sm:$0xff] %v810_v24 }
 0x108   :  { %v585_v25 = vpop.f32.mrb[12].mxu0  ;;  %v626_v27 = vpop.f32.mrb[12].mxu1 }
 0x109   :  { %v645_v26 = vmul.f32 0.2, %v585_v25  ;;  %v587_v28 = vpop.f32.mrb[13].mxu0  ;;  %v647_v29 = vmul.f32 0.2, %v626_v27  ;;  %v628_v31 = vpop.f32.mrb[13].mxu1 }
 0x10a   :  { %v646_v30 = vmul.f32 0.2, %v587_v28  ;;  %v589_v32 = vpop.f32.mrb[14].mxu0  ;;  %v648_v34 = vmul.f32 0.2, %v628_v31  ;;  %v630_v36 = vpop.f32.mrb[14].mxu1 }
 0x10b   :  { %v661_v33 = vmax.f32 %v585_v25, %v645_v26  ;;  %v590_v37 = vpop.f32.mrb[15].mxu0  ;;  %v663_v38 = vmax.f32 %v626_v27, %v647_v29  ;;  %v631_v40 = vpop.f32.mrb[15].mxu1 }
 0x10c   :  { %v662_v39 = vmax.f32 %v587_v28, %v646_v30  ;;  %v664_v3 = vmax.f32 %v628_v31, %v648_v34 }
 0x10e   :  { %v811_v41 = vpack.c.bf16 %v662_v39, %v661_v33  ;;  %v812_v42 = vpack.c.bf16 %v664_v3, %v663_v38 }
 0x110   :  { %735 = vst [vmem:[%s1029_s2 + $0x30] sm:$0xff] %v811_v41  ;;  %736 = vst [vmem:[%s1029_s2 + $0x38] sm:$0xff] %v812_v42 }

// kernel: discriminator_forward.5
= control target key start
LH: loop header
LB: loop body
LE: loop exit
PB: predicated region body
PF: predicated region fallthrough
CT: control target
= control target key end

     0   :  { %v534_v1 = vmov 0   ;;  %s677_s1 = inlined_call_operand.vmem [shape: bf16[128,512], index: 1, kind: input, shape index: {}]   ;;  %s678_s0 = inlined_call_operand.vmem [shape: bf16[16,128], index: 0, kind: input, shape index: {}]   ;;  %s679_s2 = inlined_call_operand.vmem [shape: f32[16,2], index: 2, kind: input, shape index: {}]   ;;  %s680_s3 = inlined_call_operand.vmem [shape: bf16[16,512], index: 3, kind: output, shape index: {}]  }
   0x1   :  { %v481_v0 = vld [vmem:[%s677_s1 + $0x4] ss:$16 sps:$4 sm:$0xff]   ;;  %247 = vmatprep.mubr.bf16.mxu0 %v534_v1  ;;  %290 = vmatprep.mubr.bf16.mxu1 %v534_v1  ;;  %v483_v2 = vld [vmem:[%s677_s1 + $0xc] ss:$16 sps:$4 sm:$0xff]   ;;  %v485_v3 = vld [vmem:[%s677_s1] ss:$16 sps:$4 sm:$0xff]  }
   0x2   :  { %476 = vset.pattern.permute.xlu0 %v534_v1  ;;  %215 = vmatprep.subr.bf16.mxu0 %v481_v0  ;;  %v486_v4 = vld [vmem:[%s677_s1 + $0x8] ss:$16 sps:$4 sm:$0xff]   ;;  %v487_v5 = vld [vmem:[%s677_s1 + $0x24] ss:$16 sps:$4 sm:$0xff]   ;;  %v489_v6 = vld [vmem:[%s677_s1 + $0x2c] ss:$16 sps:$4 sm:$0xff]  }
   0x3   :  { %258 = vmatprep.subr.bf16.mxu1 %v483_v2  ;;  %216 = vmatpush1.bf16.msra.mxu0 %v485_v3  ;;  %v491_v7 = vld [vmem:[%s677_s1 + $0x20] ss:$16 sps:$4 sm:$0xff]   ;;  %v492_v8 = vld [vmem:[%s677_s1 + $0x28] ss:$16 sps:$4 sm:$0xff]   ;;  %v493_v9 = vld [vmem:[%s677_s1 + $0x44] ss:$16 sps:$4 sm:$0xff]  }
   0x4   :  { %259 = vmatpush1.bf16.msra.mxu1 %v486_v4  ;;  %217 = vmatprep.subr.bf16.mxu0 %v487_v5  ;;  %v495_v10 = vld [vmem:[%s677_s1 + $0x4c] ss:$16 sps:$4 sm:$0xff]   ;;  %v497_v11 = vld [vmem:[%s677_s1 + $0x40] ss:$16 sps:$4 sm:$0xff]   ;;  %v498_v12 = vld [vmem:[%s677_s1 + $0x48] ss:$16 sps:$4 sm:$0xff]  }
   0x5   :  { %260 = vmatprep.subr.bf16.mxu1 %v489_v6  ;;  %v499_v13 = vld [vmem:[%s677_s1 + $0x64] ss:$16 sps:$4 sm:$0xff]   ;;  %v501_v14 = vld [vmem:[%s677_s1 + $0x6c] ss:$16 sps:$4 sm:$0xff]   ;;  %v503_v15 = vld [vmem:[%s677_s1 + $0x60] ss:$16 sps:$4 sm:$0xff]  }
   0x6   :  { %v504_v16 = vld [vmem:[%s677_s1 + $0x68] ss:$16 sps:$4 sm:$0xff]   ;;  %v505_v17 = vld [vmem:[%s677_s1 + $0x84] ss:$16 sps:$4 sm:$0xff]   ;;  %v507_v18 = vld [vmem:[%s677_s1 + $0x8c] ss:$16 sps:$4 sm:$0xff]  }
   0x7   :  { %218 = vmatpush1.bf16.msra.mxu0 %v491_v7  ;;  %v509_v19 = vld [vmem:[%s677_s1 + $0x80] ss:$16 sps:$4 sm:$0xff]   ;;  %v510_v20 = vld [vmem:[%s677_s1 + $0x88] ss:$16 sps:$4 sm:$0xff]   ;;  %v511_v21 = vld [vmem:[%s677_s1 + $0xa4] ss:$16 sps:$4 sm:$0xff]  }
   0x8   :  { %261 = vmatpush1.bf16.msra.mxu1 %v492_v8  ;;  %219 = vmatprep.subr.bf16.mxu0 %v493_v9  ;;  %v513_v22 = vld [vmem:[%s677_s1 + $0xac] ss:$16 sps:$4 sm:$0xff]   ;;  %v515_v23 = vld [vmem:[%s677_s1 + $0xa0] ss:$16 sps:$4 sm:$0xff]   ;;  %v516_v24 = vld [vmem:[%s677_s1 + $0xa8] ss:$16 sps:$4 sm:$0xff]  }
   0x9   :  { %262 = vmatprep.subr.bf16.mxu1 %v495_v10  ;;  %v517_v25 = vld [vmem:[%s677_s1 + $0xc4] ss:$16 sps:$4 sm:$0xff]   ;;  %v519_v26 = vld [vmem:[%s677_s1 + $0xcc] ss:$16 sps:$4 sm:$0xff]   ;;  %v521_v27 = vld [vmem:[%s677_s1 + $0xc0] ss:$16 sps:$4 sm:$0xff]  }
   0xa   :  { %v522_v28 = vld [vmem:[%s677_s1 + $0xc8] ss:$16 sps:$4 sm:$0xff]   ;;  %v523_v29 = vld [vmem:[%s677_s1 + $0xe4] ss:$16 sps:$4 sm:$0xff]   ;;  %v525_v30 = vld [vmem:[%s677_s1 + $0xec] ss:$16 sps:$4 sm:$0xff]  }
   0xb   :  { %220 = vmatpush1.bf16.msra.mxu0 %v497_v11  ;;  %v527_v31 = vld [vmem:[%s677_s1 + $0xe0] ss:$16 sps:$4 sm:$0xff]   ;;  %v528_v32 = vld [vmem:[%s677_s1 + $0xe8] ss:$16 sps:$4 sm:$0xff]   ;;  %v535_v11 = vmov 1  }
   0xc   :  { %263 = vmatpush1.bf16.msra.mxu1 %v498_v12  ;;  %221 = vmatprep.subr.bf16.mxu0 %v499_v13  ;;  %v529_v33 = vld [vmem:[%s678_s0] sm:$0xff]  }
   0xd   :  { %264 = vmatprep.subr.bf16.mxu1 %v501_v14  ;;  %477 = vset.pattern.permute.xlu1 %v535_v11  ;;  %v301_v12 = vld [vmem:[%s679_s2] sm:$0xff] }
   0xf   :  { %222 = vmatpush1.bf16.msra.mxu0 %v503_v15 }
  0x10   :  { %265 = vmatpush1.bf16.msra.mxu1 %v504_v16  ;;  %223 = vmatprep.subr.bf16.mxu0 %v505_v17 }
  0x11   :  { %266 = vmatprep.subr.bf16.mxu1 %v507_v18 }
  0x13   :  { %224 = vmatpush1.bf16.msra.mxu0 %v509_v19 }
  0x14   :  { %267 = vmatpush1.bf16.msra.mxu1 %v510_v20  ;;  %225 = vmatprep.subr.bf16.mxu0 %v511_v21  ;;  %v302_v21 = vld [vmem:[%s679_s2 + $0x8] sm:$0xff] }
  0x15   :  { %268 = vmatprep.subr.bf16.mxu1 %v513_v22 }
  0x17   :  { %226 = vmatpush1.bf16.msra.mxu0 %v515_v23 }
  0x18   :  { %269 = vmatpush1.bf16.msra.mxu1 %v516_v24  ;;  %227 = vmatprep.subr.bf16.mxu0 %v517_v25 }
  0x19   :  { %270 = vmatprep.subr.bf16.mxu1 %v519_v26 }
  0x1b   :  { %228 = vmatpush1.bf16.msra.mxu0 %v521_v27 }
  0x1c   :  { %271 = vmatpush1.bf16.msra.mxu1 %v522_v28  ;;  %229 = vmatprep.subr.bf16.mxu0 %v523_v29 }
  0x1d   :  { %272 = vmatprep.subr.bf16.mxu1 %v525_v30 }
  0x1f   :  { %230 = vmatpush1.bf16.msra.mxu0 %v527_v31 }
  0x20   :  { %273 = vmatpush1.bf16.msra.mxu1 %v528_v32 }
  0x22   :  { %248 = vmatmul.mubr.bf16.vlgmr.msra.gmra.mrb[0].mxu0 %v529_v33 }
  0x23   :  { %291 = vmatmul.mubr.bf16.vlgmr.msra.gmra.mrb[0].mxu1 %v529_v33 }
  0xf5   :  { %v249_v34 = vpop.f32.mrb[0].mxu0 }
  0xf6   :  { %v292_v35 = vpop.f32.mrb[0].mxu1  ;;  %v251_v36 = vpop.f32.mrb[1].mxu0 }
  0xf7   :  { %v294_v37 = vpop.f32.mrb[1].mxu1  ;;  %v303_v38 = vadd.f32 %v251_v36, %v249_v34  ;;  %v253_v39 = vpop.f32.mrb[2].mxu0 }
  0xf8   :  { %v296_v40 = vpop.f32.mrb[2].mxu1  ;;  %v255_v41 = vpop.f32.mrb[3].mxu0 }
  0xf9   :  { %v298_v42 = vpop.f32.mrb[3].mxu1  ;;  %v308_v43 = vadd.f32 %v255_v41, %v253_v39  ;;  %v304_v44 = vadd.f32 %v303_v38, %v292_v35 }
  0xfb   :  { %v309_v45 = vadd.f32 %v308_v43, %v296_v40  ;;  %v305_v46 = vadd.f32 %v304_v44, %v294_v37 }
  0xfd   :  { %v310_v47 = vadd.f32 %v309_v45, %v298_v42  ;;  %306 = vadd.xlane.f32.xlu0 %v305_v46 }
 0x101   :  { %311 = vadd.xlane.f32.xlu0 %v310_v47 }
 0x18a   :  { %v307_v48 = vpop.xlane.xlu0 %306 }
 0x18b   :  { %v313_v49 = vmul.f32 0.001953125, %v307_v48 }
 0x18d   :  { %v315_v50 = vsub.f32 %v249_v34, %v313_v49  ;;  %v316_v51 = vsub.f32 %v251_v36, %v313_v49  ;;  %v317_v52 = vsub.f32 %v292_v35, %v313_v49  ;;  %v318_v54 = vsub.f32 %v294_v37, %v313_v49 }
 0x18e   :  { %v312_v53 = vpop.xlane.xlu0 %311 }
 0x18f   :  { %v314_v55 = vmul.f32 0.001953125, %v312_v53  ;;  %v323_v56 = vmul.f32 %v315_v50, %v315_v50  ;;  %v324_v57 = vmul.f32 %v316_v51, %v316_v51  ;;  %v325_v58 = vmul.f32 %v317_v52, %v317_v52 }
 0x190   :  { %v326_v63 = vmul.f32 %v318_v54, %v318_v54 }
 0x191   :  { %v319_v59 = vsub.f32 %v253_v39, %v314_v55  ;;  %v320_v60 = vsub.f32 %v255_v41, %v314_v55  ;;  %v331_v61 = vadd.f32 %v324_v57, %v323_v56  ;;  %v321_v62 = vsub.f32 %v296_v40, %v314_v55 }
 0x192   :  { %v322_v2 = vsub.f32 %v298_v42, %v314_v55 }
 0x193   :  { %v332_v0 = vadd.f32 %v331_v61, %v325_v58  ;;  %v327_v3 = vmul.f32 %v319_v59, %v319_v59  ;;  %v328_v4 = vmul.f32 %v320_v60, %v320_v60  ;;  %v329_v6 = vmul.f32 %v321_v62, %v321_v62 }
 0x194   :  { %v330_v8 = vmul.f32 %v322_v2, %v322_v2 }
 0x195   :  { %v333_v5 = vadd.f32 %v332_v0, %v326_v63  ;;  %v336_v7 = vadd.f32 %v328_v4, %v327_v3 }
 0x197   :  { %334 = vadd.xlane.f32.xlu1 %v333_v5  ;;  %v337_v9 = vadd.f32 %v336_v7, %v329_v6 }
 0x199   :  { %v338_v10 = vadd.f32 %v337_v9, %v330_v8 }
 0x19b   :  { %339 = vadd.xlane.f32.xlu1 %v338_v10 }
 0x1ac   :  { %369 = vperm.xlu1 %477, %v301_v12  }
 0x1b0   :  { %478 = vset.pattern.permute.xlu1 %v534_v1 }
 0x224   :  { %v335_v13 = vpop.xlane.xlu1 %334 }
 0x225   :  { %v341_v14 = vmul.f32 0.001953125, %v335_v13 }
 0x227   :  { %v343_v15 = vadd.f32 1e-05, %v341_v14 }
 0x228   :  { %v340_v16 = vpop.xlane.xlu1 %339 }
 0x229   :  { %530 = vrsqrt.f32 %v343_v15  ;;  %v342_v17 = vmul.f32 0.001953125, %v340_v16 }
 0x22b   :  { %v344_v18 = vadd.f32 1e-05, %v342_v17 }
 0x22c   :  { %v370_v1 = vpop.permute.xlu1 %369 }
 0x22d   :  { %532 = vrsqrt.f32 %v344_v18 }
 0x233   :  { %v531_v19 = vpop.eup %530 }
 0x234   :  { %v347_v20 = vmul.f32 %v531_v19, %v301_v12 }
 0x236   :  { %351 = vperm.xlu0 %476, %v347_v20  }
 0x237   :  { %v533_v22 = vpop.eup %532 }
 0x238   :  { %v348_v23 = vmul.f32 %v533_v22, %v302_v21 }
 0x23a   :  { %356 = vperm.xlu1 %478, %v348_v23   ;;  %480 = vset.pattern.permute.xlu0 %v535_v11 }
 0x23e   :  { %479 = vset.pattern.permute.xlu1 %v535_v11 }
 0x23f   :  { %374 = vperm.xlu1 %479, %v302_v21  }
 0x2b5   :  { %v352_v24 = vpop.permute.xlu0 %351 }
 0x2b6   :  { %v359_v25 = vmul.f32 %v352_v24, %v315_v50  ;;  %v360_v26 = vmul.f32 %v352_v24, %v316_v51  ;;  %v361_v27 = vmul.f32 %v352_v24, %v317_v52  ;;  %v362_v28 = vmul.f32 %v352_v24, %v318_v54 }
 0x2b8   :  { %v377_v29 = vadd.f32 %v370_v1, %v359_v25  ;;  %v378_v30 = vadd.f32 %v370_v1, %v360_v26  ;;  %v379_v31 = vadd.f32 %v370_v1, %v361_v27  ;;  %v380_v32 = vadd.f32 %v370_v1, %v362_v28 }
 0x2b9   :  { %v357_v33 = vpop.permute.xlu1 %356 }
 0x2ba   :  { %v385_v34 = vmul.f32 0.2, %v377_v29  ;;  %v386_v35 = vmul.f32 0.2, %v378_v30  ;;  %v387_v36 = vmul.f32 0.2, %v379_v31  ;;  %v363_v42 = vmul.f32 %v357_v33, %v319_v59 }
 0x2bb   :  { %v388_v37 = vmul.f32 0.2, %v380_v32  ;;  %v364_v43 = vmul.f32 %v357_v33, %v320_v60  ;;  %v365_v44 = vmul.f32 %v357_v33, %v321_v62  ;;  %v366_v46 = vmul.f32 %v357_v33, %v322_v2 }
 0x2bc   :  { %v393_v38 = vmax.f32 %v377_v29, %v385_v34  ;;  %v394_v39 = vmax.f32 %v378_v30, %v386_v35  ;;  %v395_v40 = vmax.f32 %v379_v31, %v387_v36 }
 0x2bd   :  { %v396_v41 = vmax.f32 %v380_v32, %v388_v37 }
 0x2be   :  { %v470_v45 = vpack.c.bf16 %v394_v39, %v393_v38  ;;  %v375_v47 = vpop.permute.xlu1 %374 }
 0x2bf   :  { %v471_v48 = vpack.c.bf16 %v396_v41, %v395_v40  ;;  %v381_v49 = vadd.f32 %v375_v47, %v363_v42  ;;  %v382_v50 = vadd.f32 %v375_v47, %v364_v43  ;;  %v383_v51 = vadd.f32 %v375_v47, %v365_v44 }
 0x2c0   :  { %425 = vst [vmem:[%s680_s3] sm:$0xff] %v470_v45  ;;  %v384_v52 = vadd.f32 %v375_v47, %v366_v46 }
 0x2c1   :  { %426 = vst [vmem:[%s680_s3 + $0x8] sm:$0xff] %v471_v48  ;;  %v389_v53 = vmul.f32 0.2, %v381_v49  ;;  %v390_v54 = vmul.f32 0.2, %v382_v50 }
 0x2c2   :  { %v391_v55 = vmul.f32 0.2, %v383_v51  ;;  %v392_v56 = vmul.f32 0.2, %v384_v52 }
 0x2c3   :  { %v397_v57 = vmax.f32 %v381_v49, %v389_v53  ;;  %v398_v58 = vmax.f32 %v382_v50, %v390_v54 }
 0x2c4   :  { %v399_v59 = vmax.f32 %v383_v51, %v391_v55  ;;  %v400_v60 = vmax.f32 %v384_v52, %v392_v56 }
 0x2c5   :  { %v472_v61 = vpack.c.bf16 %v398_v58, %v397_v57 }
 0x2c6   :  { %v473_v62 = vpack.c.bf16 %v400_v60, %v399_v59 }
 0x2c7   :  { %427 = vst [vmem:[%s680_s3 + $0x10] sm:$0xff] %v472_v61 }
 0x2c8   :  { %428 = vst [vmem:[%s680_s3 + $0x18] sm:$0xff] %v473_v62 }

// kernel: discriminator_forward.6
= control target key start
LH: loop header
LB: loop body
LE: loop exit
PB: predicated region body
PF: predicated region fallthrough
CT: control target
= control target key end

     0   :  { %v464_v32 = vmov 1   ;;  %v465_v52 = vmov 0   ;;  %s574_s1 = inlined_call_operand.vmem [shape: bf16[256,128], index: 1, kind: input, shape index: {}]   ;;  %s575_s0 = inlined_call_operand.vmem [shape: bf16[32,256], index: 0, kind: input, shape index: {}]   ;;  %s576_s2 = inlined_call_operand.vmem [shape: f32[32,2], index: 2, kind: input, shape index: {}]   ;;  %s577_s3 = inlined_call_operand.vmem [shape: bf16[32,128], index: 3, kind: output, shape index: {}]  }
   0x1   :  { %v434_v0 = vld [vmem:[%s574_s1 + $0x40] sm:$0xff]   ;;  %v436_v2 = vld [vmem:[%s574_s1 + $0x48] sm:$0xff]   ;;  %v438_v4 = vld [vmem:[%s574_s1 + $0x50] sm:$0xff]   ;;  %430 = vset.pattern.permute.xlu1 %v464_v32  ;;  %429 = vset.pattern.permute.xlu0 %v465_v52 }
   0x2   :  { %v435_v1 = vld [vmem:[%s574_s1] sm:$0xff]   ;;  %383 = vmatprep.subr.bf16.mxu0 %v434_v0  ;;  %411 = vmatprep.subr.bf16.mxu1 %v434_v0  ;;  %v437_v3 = vld [vmem:[%s574_s1 + $0x8] sm:$0xff]   ;;  %v439_v5 = vld [vmem:[%s574_s1 + $0x10] sm:$0xff]  }
   0x3   :  { %384 = vmatpush3.bf16.msra.mxu0 %v435_v1  ;;  %419 = vmatpush3.bf16.msra.mxu1 %v435_v1  ;;  %v440_v6 = vld [vmem:[%s574_s1 + $0x58] sm:$0xff]   ;;  %v442_v8 = vld [vmem:[%s574_s1 + $0x60] sm:$0xff]   ;;  %v444_v10 = vld [vmem:[%s574_s1 + $0x68] sm:$0xff]  }
   0x4   :  { %385 = vmatprep.subr.bf16.mxu0 %v436_v2  ;;  %412 = vmatprep.subr.bf16.mxu1 %v436_v2  ;;  %v441_v7 = vld [vmem:[%s574_s1 + $0x18] sm:$0xff]   ;;  %v443_v9 = vld [vmem:[%s574_s1 + $0x20] sm:$0xff]   ;;  %v445_v13 = vld [vmem:[%s574_s1 + $0x28] sm:$0xff]  }
   0x5   :  { %v452_v11 = vld [vmem:[%s575_s0 + $0x4] ss:$8 sps:$4 sm:$0xff]   ;;  %v455_v12 = vld [vmem:[%s575_s0 + $0x14] ss:$8 sps:$4 sm:$0xff]   ;;  %v450_v18 = vld [vmem:[%s575_s0] ss:$8 sps:$4 sm:$0xff]  }
   0x6   :  { %v446_v14 = vld [vmem:[%s574_s1 + $0x70] sm:$0xff]   ;;  %199 = vmatprep.mubr.bf16.mxu0 %v452_v11  ;;  %207 = vmatprep.mubr.bf16.mxu1 %v455_v12  ;;  %v448_v16 = vld [vmem:[%s574_s1 + $0x78] sm:$0xff]   ;;  %v216_v49 = vld [vmem:[%s576_s2] sm:$0xff] }
   0x7   :  { %386 = vmatpush3.bf16.msra.mxu0 %v437_v3  ;;  %420 = vmatpush3.bf16.msra.mxu1 %v437_v3  ;;  %v447_v15 = vld [vmem:[%s574_s1 + $0x30] sm:$0xff]   ;;  %v449_v17 = vld [vmem:[%s574_s1 + $0x38] sm:$0xff]   ;;  %v217_v50 = vld [vmem:[%s576_s2 + $0x8] sm:$0xff] }
   0x8   :  { %387 = vmatprep.subr.bf16.mxu0 %v438_v4  ;;  %413 = vmatprep.subr.bf16.mxu1 %v438_v4  ;;  %v453_v19 = vld [vmem:[%s575_s0 + $0x10] ss:$8 sps:$4 sm:$0xff]  }
   0x9   :  { %v218_v51 = vld [vmem:[%s576_s2 + $0x10] sm:$0xff] }
   0xb   :  { %388 = vmatpush3.bf16.msra.mxu0 %v439_v5  ;;  %421 = vmatpush3.bf16.msra.mxu1 %v439_v5 }
   0xc   :  { %389 = vmatprep.subr.bf16.mxu0 %v440_v6  ;;  %414 = vmatprep.subr.bf16.mxu1 %v440_v6 }
   0xf   :  { %390 = vmatpush3.bf16.msra.mxu0 %v441_v7  ;;  %422 = vmatpush3.bf16.msra.mxu1 %v441_v7 }
  0x10   :  { %391 = vmatprep.subr.bf16.mxu0 %v442_v8  ;;  %415 = vmatprep.subr.bf16.mxu1 %v442_v8  ;;  %v219_v8 = vld [vmem:[%s576_s2 + $0x18] sm:$0xff] }
  0x13   :  { %392 = vmatpush3.bf16.msra.mxu0 %v443_v9  ;;  %423 = vmatpush3.bf16.msra.mxu1 %v443_v9 }
  0x14   :  { %393 = vmatprep.subr.bf16.mxu0 %v444_v10  ;;  %416 = vmatprep.subr.bf16.mxu1 %v444_v10 }
  0x17   :  { %394 = vmatpush3.bf16.msra.mxu0 %v445_v13  ;;  %424 = vmatpush3.bf16.msra.mxu1 %v445_v13 }
  0x18   :  { %395 = vmatprep.subr.bf16.mxu0 %v446_v14  ;;  %417 = vmatprep.subr.bf16.mxu1 %v446_v14 }
  0x1b   :  { %396 = vmatpush3.bf16.msra.mxu0 %v447_v15  ;;  %425 = vmatpush3.bf16.msra.mxu1 %v447_v15 }
  0x1c   :  { %397 = vmatprep.subr.bf16.mxu0 %v448_v16  ;;  %418 = vmatprep.subr.bf16.mxu1 %v448_v16 }
  0x1f   :  { %398 = vmatpush3.bf16.msra.mxu0 %v449_v17  ;;  %426 = vmatpush3.bf16.msra.mxu1 %v449_v17 }
  0x22   :  { %200 = vmatmul.mubr.bf16.vlgmr.msra.gmra.mrb[0].mxu0 %v450_v18  ;;  %208 = vmatmul.mubr.bf16.vlgmr.msra.gmra.mrb[0].mxu1 %v453_v19 }
  0xf5   :  { %v399_v20 = vpop.f32.mrb[0].mxu0  ;;  %v405_v21 = vpop.f32.mrb[0].mxu1 }
  0xf6   :  { %v400_v22 = vpop.f32.mrb[1].mxu0  ;;  %v406_v23 = vpop.f32.mrb[1].mxu1 }
  0xf7   :  { %v401_v24 = vadd.f32 %v400_v22, %v399_v20  ;;  %v407_v25 = vadd.f32 %v406_v23, %v405_v21  ;;  %v402_v26 = vpop.f32.mrb[2].mxu0  ;;  %v408_v27 = vpop.f32.mrb[2].mxu1 }
  0xf8   :  { %v403_v28 = vpop.f32.mrb[3].mxu0  ;;  %v409_v29 = vpop.f32.mrb[3].mxu1 }
  0xf9   :  { %v404_v30 = vadd.f32 %v403_v28, %v402_v26  ;;  %v410_v31 = vadd.f32 %v409_v29, %v408_v27  ;;  %224 = vadd.xlane.f32.xlu1 %v407_v25  ;;  %220 = vadd.xlane.f32.xlu0 %v401_v24 }
  0xfd   :  { %226 = vadd.xlane.f32.xlu1 %v410_v31  ;;  %222 = vadd.xlane.f32.xlu0 %v404_v30 }
 0x186   :  { %v225_v33 = vpop.xlane.xlu1 %224  ;;  %v221_v34 = vpop.xlane.xlu0 %220 }
 0x187   :  { %v230_v35 = vmul.f32 0.0078125, %v225_v33  ;;  %v228_v36 = vmul.f32 0.0078125, %v221_v34 }
 0x189   :  { %v232_v37 = vsub.f32 %v401_v24, %v228_v36  ;;  %v546_v40 = vsub.f32 %v407_v25, %v230_v35 }
 0x18a   :  { %v227_v38 = vpop.xlane.xlu1 %226  ;;  %v223_v39 = vpop.xlane.xlu0 %222 }
 0x18b   :  { %v231_v41 = vmul.f32 0.0078125, %v227_v38  ;;  %v229_v42 = vmul.f32 0.0078125, %v223_v39  ;;  %v236_v43 = vmul.f32 %v232_v37, %v232_v37  ;;  %v238_v46 = vmul.f32 %v546_v40, %v546_v40 }
 0x18d   :  { %v233_v44 = vsub.f32 %v404_v30, %v229_v42  ;;  %240 = vadd.xlane.f32.xlu0 %v236_v43  ;;  %v548_v45 = vsub.f32 %v410_v31, %v231_v41 }
 0x18f   :  { %v237_v47 = vmul.f32 %v233_v44, %v233_v44  ;;  %v239_v48 = vmul.f32 %v548_v45, %v548_v45 }
 0x191   :  { %244 = vadd.xlane.f32.xlu0 %v238_v46  ;;  %242 = vadd.xlane.f32.xlu1 %v237_v47 }
 0x195   :  { %246 = vadd.xlane.f32.xlu1 %v239_v48 }
 0x1a6   :  { %290 = vperm.xlu1 %430, %v216_v49  }
 0x1aa   :  { %295 = vperm.xlu1 %430, %v217_v50  }
 0x1ae   :  { %300 = vperm.xlu1 %430, %v218_v51  }
 0x1b2   :  { %431 = vset.pattern.permute.xlu1 %v465_v52 }
 0x21a   :  { %v241_v53 = vpop.xlane.xlu0 %240 }
 0x21b   :  { %v248_v54 = vmul.f32 0.0078125, %v241_v53 }
 0x21d   :  { %v252_v55 = vadd.f32 1e-05, %v248_v54 }
 0x21e   :  { %v243_v56 = vpop.xlane.xlu1 %242  ;;  %v245_v57 = vpop.xlane.xlu0 %244 }
 0x21f   :  { %456 = vrsqrt.f32 %v252_v55  ;;  %v249_v58 = vmul.f32 0.0078125, %v243_v56  ;;  %v250_v59 = vmul.f32 0.0078125, %v245_v57 }
 0x221   :  { %v254_v60 = vadd.f32 1e-05, %v250_v59  ;;  %v253_v61 = vadd.f32 1e-05, %v249_v58 }
 0x222   :  { %v247_v62 = vpop.xlane.xlu1 %246 }
 0x223   :  { %v251_v63 = vmul.f32 0.0078125, %v247_v62  ;;  %458 = vrsqrt.f32 %v254_v60 }
 0x224   :  { %460 = vrsqrt.f32 %v253_v61 }
 0x225   :  { %v255_v0 = vadd.f32 1e-05, %v251_v63 }
 0x226   :  { %v291_v10 = vpop.permute.xlu1 %290 }
 0x227   :  { %462 = vrsqrt.f32 %v255_v0 }
 0x229   :  { %v457_v1 = vpop.eup %456 }
 0x22a   :  { %v260_v2 = vmul.f32 %v457_v1, %v216_v49  ;;  %v296_v11 = vpop.permute.xlu1 %295 }
 0x22c   :  { %266 = vperm.xlu0 %429, %v260_v2  }
 0x22d   :  { %v459_v3 = vpop.eup %458 }
 0x22e   :  { %v262_v4 = vmul.f32 %v459_v3, %v218_v51  ;;  %v461_v5 = vpop.eup %460  ;;  %v301_v12 = vpop.permute.xlu1 %300 }
 0x22f   :  { %v261_v6 = vmul.f32 %v461_v5, %v217_v50 }
 0x230   :  { %433 = vset.pattern.permute.xlu0 %v464_v32  ;;  %276 = vperm.xlu1 %431, %v262_v4  }
 0x231   :  { %v463_v7 = vpop.eup %462 }
 0x232   :  { %v263_v9 = vmul.f32 %v463_v7, %v219_v8 }
 0x234   :  { %271 = vperm.xlu1 %431, %v261_v6  }
 0x238   :  { %281 = vperm.xlu1 %431, %v263_v9  }
 0x23c   :  { %432 = vset.pattern.permute.xlu1 %v464_v32 }
 0x23d   :  { %305 = vperm.xlu1 %432, %v219_v8  }
 0x2ab   :  { %v267_v13 = vpop.permute.xlu0 %266 }
 0x2ac   :  { %v284_v14 = vmul.f32 %v267_v13, %v232_v37 }
 0x2ae   :  { %v308_v16 = vadd.f32 %v291_v10, %v284_v14 }
 0x2af   :  { %v277_v15 = vpop.permute.xlu1 %276 }
 0x2b0   :  { %v286_v19 = vmul.f32 %v277_v15, %v546_v40  ;;  %v312_v20 = vmul.f32 0.2, %v308_v16 }
 0x2b2   :  { %v310_v24 = vadd.f32 %v301_v12, %v286_v19  ;;  %v316_v25 = vmax.f32 %v308_v16, %v312_v20 }
 0x2b3   :  { %v272_v17 = vpop.permute.xlu1 %271 }
 0x2b4   :  { %v285_v18 = vmul.f32 %v272_v17, %v233_v44  ;;  %v314_v30 = vmul.f32 0.2, %v310_v24 }
 0x2b6   :  { %v309_v21 = vadd.f32 %v296_v11, %v285_v18  ;;  %v318_v33 = vmax.f32 %v310_v24, %v314_v30 }
 0x2b7   :  { %v282_v22 = vpop.permute.xlu1 %281 }
 0x2b8   :  { %v313_v23 = vmul.f32 0.2, %v309_v21  ;;  %v287_v27 = vmul.f32 %v282_v22, %v548_v45 }
 0x2ba   :  { %v317_v26 = vmax.f32 %v309_v21, %v313_v23 }
 0x2bc   :  { %v375_v28 = vpack.c.bf16 %v317_v26, %v316_v25  ;;  %v306_v29 = vpop.permute.xlu1 %305 }
 0x2bd   :  { %v311_v31 = vadd.f32 %v306_v29, %v287_v27 }
 0x2be   :  { %376 = vst [vmem:[%s577_s3] sm:$0xff] %v375_v28  }
 0x2bf   :  { %v315_v32 = vmul.f32 0.2, %v311_v31 }
 0x2c1   :  { %v319_v34 = vmax.f32 %v311_v31, %v315_v32 }
 0x2c3   :  { %v380_v35 = vpack.c.bf16 %v319_v34, %v318_v33 }
 0x2c5   :  { %382 = vst [vmem:[%s577_s3 + $0x8] sm:$0xff] %v380_v35  }

// kernel: discriminator_forward.7
= control target key start
LH: loop header
LB: loop body
LE: loop exit
PB: predicated region body
PF: predicated region fallthrough
CT: control target
= control target key end

     0   :  { %s1679_s0 = inlined_call_operand.vmem [shape: bf16[64,512], index: 0, kind: input, shape index: {}]   ;;  %s1680_s1 = inlined_call_operand.vmem [shape: bf16[512,32], index: 1, kind: input, shape index: {}]   ;;  %s1681_s2 = inlined_call_operand.vmem [shape: f32[64,2], index: 2, kind: input, shape index: {}]   ;;  %s1682_s3 = inlined_call_operand.vmem [shape: f32[16,32], index: 3, kind: input, shape index: {}]   ;;  %s1683_s4 = inlined_call_operand.vmem [shape: f32[16,1], index: 4, kind: input, shape index: {}]   ;;  %s1684_s5 = inlined_call_operand.vmem [shape: f32[32,2], index: 5, kind: input, shape index: {}]   ;;  %s1685_s6 = inlined_call_operand.vmem [shape: f32[64,32], index: 6, kind: input, shape index: {}]   ;;  %s1686_s7 = inlined_call_operand.vmem [shape: f32[16,1], index: 7, kind: input, shape index: {}]   ;;  %s1687_s8 = inlined_call_operand.vmem [shape: f32[32,2], index: 8, kind: input, shape index: {}]   ;;  %s1688_s9 = inlined_call_operand.hbm [shape: f32[1,2], index: 9, kind: output, shape index: {}]  }
   0x1   :  { %v1195_v0 = vld [vmem:[%s1680_s1 + $0x40] sm:$0xff]   ;;  %v1199_v4 = vld [vmem:[%s1680_s1 + $0x48] sm:$0xff]   ;;  %v1203_v8 = vld [vmem:[%s1680_s1 + $0x50] sm:$0xff]  }
   0x2   :  { %v1196_v1 = vld [vmem:[%s1680_s1 + $0xc0] sm:$0xff]   ;;  %1055 = vmatprep.subr.bf16.mxu0 %v1195_v0  ;;  %v1200_v5 = vld [vmem:[%s1680_s1 + $0xc8] sm:$0xff]   ;;  %v1204_v9 = vld [vmem:[%s1680_s1 + $0xd0] sm:$0xff]  }
   0x3   :  { %v1197_v2 = vld [vmem:[%s1680_s1] sm:$0xff]   ;;  %1095 = vmatprep.subr.bf16.mxu1 %v1196_v1  ;;  %v1201_v6 = vld [vmem:[%s1680_s1 + $0x8] sm:$0xff]   ;;  %v1205_v10 = vld [vmem:[%s1680_s1 + $0x10] sm:$0xff]  }
   0x4   :  { %v1198_v3 = vld [vmem:[%s1680_s1 + $0x80] sm:$0xff]   ;;  %1056 = vmatpush3.bf16.msra.mxu0 %v1197_v2  ;;  %v1202_v7 = vld [vmem:[%s1680_s1 + $0x88] sm:$0xff]   ;;  %v1206_v11 = vld [vmem:[%s1680_s1 + $0x90] sm:$0xff]  }
   0x5   :  { %1096 = vmatpush3.bf16.msra.mxu1 %v1198_v3  ;;  %1057 = vmatprep.subr.bf16.mxu0 %v1199_v4  ;;  %v1207_v12 = vld [vmem:[%s1680_s1 + $0x58] sm:$0xff]   ;;  %v1211_v16 = vld [vmem:[%s1680_s1 + $0x60] sm:$0xff]   ;;  %v1215_v20 = vld [vmem:[%s1680_s1 + $0x68] sm:$0xff]  }
   0x6   :  { %1097 = vmatprep.subr.bf16.mxu1 %v1200_v5  ;;  %v1208_v13 = vld [vmem:[%s1680_s1 + $0xd8] sm:$0xff]   ;;  %v1212_v17 = vld [vmem:[%s1680_s1 + $0xe0] sm:$0xff]   ;;  %v1216_v21 = vld [vmem:[%s1680_s1 + $0xe8] sm:$0xff]  }
   0x7   :  { %v1209_v14 = vld [vmem:[%s1680_s1 + $0x18] sm:$0xff]   ;;  %v1213_v18 = vld [vmem:[%s1680_s1 + $0x20] sm:$0xff]   ;;  %v1217_v22 = vld [vmem:[%s1680_s1 + $0x28] sm:$0xff]  }
   0x8   :  { %1058 = vmatpush3.bf16.msra.mxu0 %v1201_v6  ;;  %v1210_v15 = vld [vmem:[%s1680_s1 + $0x98] sm:$0xff]   ;;  %v1214_v19 = vld [vmem:[%s1680_s1 + $0xa0] sm:$0xff]   ;;  %v1218_v23 = vld [vmem:[%s1680_s1 + $0xa8] sm:$0xff]  }
   0x9   :  { %1098 = vmatpush3.bf16.msra.mxu1 %v1202_v7  ;;  %1059 = vmatprep.subr.bf16.mxu0 %v1203_v8  ;;  %v1219_v24 = vld [vmem:[%s1680_s1 + $0x70] sm:$0xff]   ;;  %v1223_v28 = vld [vmem:[%s1680_s1 + $0x78] sm:$0xff]  }
   0xa   :  { %1099 = vmatprep.subr.bf16.mxu1 %v1204_v9  ;;  %v1220_v25 = vld [vmem:[%s1680_s1 + $0xf0] sm:$0xff]   ;;  %v1224_v29 = vld [vmem:[%s1680_s1 + $0xf8] sm:$0xff]  }
   0xb   :  { %v1221_v26 = vld [vmem:[%s1680_s1 + $0x30] sm:$0xff]   ;;  %v1225_v30 = vld [vmem:[%s1680_s1 + $0x38] sm:$0xff]  }
   0xc   :  { %1060 = vmatpush3.bf16.msra.mxu0 %v1205_v10  ;;  %v1222_v27 = vld [vmem:[%s1680_s1 + $0xb0] sm:$0xff]   ;;  %v1226_v31 = vld [vmem:[%s1680_s1 + $0xb8] sm:$0xff]  }
   0xd   :  { %1100 = vmatpush3.bf16.msra.mxu1 %v1206_v11  ;;  %1061 = vmatprep.subr.bf16.mxu0 %v1207_v12  ;;  %v1227_v32 = vld [vmem:[%s1679_s0] ss:$16 sps:$4 sm:$0xff]   ;;  %v1229_v33 = vld [vmem:[%s1679_s0 + $0x4] ss:$16 sps:$4 sm:$0xff]   ;;  %v1230_v34 = vld [vmem:[%s1679_s0 + $0x8] ss:$16 sps:$4 sm:$0xff]  }
   0xe   :  { %1101 = vmatprep.subr.bf16.mxu1 %v1208_v13  ;;  %v1232_v35 = vld [vmem:[%s1679_s0 + $0xc] ss:$16 sps:$4 sm:$0xff]   ;;  %418 = vmatprep.mubr.bf16.mxu0 %v1229_v33  ;;  %v1233_v36 = vld [vmem:[%s1679_s0 + $0x24] ss:$16 sps:$4 sm:$0xff]   ;;  %v1237_v38 = vld [vmem:[%s1679_s0 + $0x20] ss:$16 sps:$4 sm:$0xff]  }
   0xf   :  { %483 = vmatprep.mubr.bf16.mxu1 %v1232_v35  ;;  %v1235_v37 = vld [vmem:[%s1679_s0 + $0x2c] ss:$16 sps:$4 sm:$0xff]   ;;  %v1238_v39 = vld [vmem:[%s1679_s0 + $0x28] ss:$16 sps:$4 sm:$0xff]   ;;  %v1239_v40 = vld [vmem:[%s1679_s0 + $0x44] ss:$16 sps:$4 sm:$0xff]  }
  0x10   :  { %1062 = vmatpush3.bf16.msra.mxu0 %v1209_v14  ;;  %v1241_v41 = vld [vmem:[%s1679_s0 + $0x4c] ss:$16 sps:$4 sm:$0xff]  }
  0x11   :  { %1102 = vmatpush3.bf16.msra.mxu1 %v1210_v15  ;;  %1063 = vmatprep.subr.bf16.mxu0 %v1211_v16 }
  0x12   :  { %1103 = vmatprep.subr.bf16.mxu1 %v1212_v17 }
  0x14   :  { %1064 = vmatpush3.bf16.msra.mxu0 %v1213_v18 }
  0x15   :  { %1104 = vmatpush3.bf16.msra.mxu1 %v1214_v19  ;;  %1065 = vmatprep.subr.bf16.mxu0 %v1215_v20 }
  0x16   :  { %1105 = vmatprep.subr.bf16.mxu1 %v1216_v21 }
  0x18   :  { %1066 = vmatpush3.bf16.msra.mxu0 %v1217_v22 }
  0x19   :  { %1106 = vmatpush3.bf16.msra.mxu1 %v1218_v23  ;;  %1067 = vmatprep.subr.bf16.mxu0 %v1219_v24 }
  0x1a   :  { %1107 = vmatprep.subr.bf16.mxu1 %v1220_v25 }
  0x1c   :  { %1068 = vmatpush3.bf16.msra.mxu0 %v1221_v26 }
  0x1d   :  { %1108 = vmatpush3.bf16.msra.mxu1 %v1222_v27  ;;  %1069 = vmatprep.subr.bf16.mxu0 %v1223_v28 }
  0x1e   :  { %1109 = vmatprep.subr.bf16.mxu1 %v1224_v29 }
  0x20   :  { %1070 = vmatpush3.bf16.msra.mxu0 %v1225_v30 }
  0x21   :  { %1110 = vmatpush3.bf16.msra.mxu1 %v1226_v31 }
  0x23   :  { %419 = vmatmul.mubr.bf16.vlgmr.msra.gmra.mrb[0].mxu0 %v1227_v32 }
  0x24   :  { %484 = vmatmul.mubr.bf16.vlgmr.msra.gmra.mrb[0].mxu1 %v1230_v34  ;;  %426 = vmatprep.mubr.bf16.mxu0 %v1233_v36 }
  0x25   :  { %491 = vmatprep.mubr.bf16.mxu1 %v1235_v37 }
  0x26   :  { %14 = vsyncpa [#allocation3], 0  ;;  %v1243_v42 = vld [vmem:[%s1679_s0 + $0x40] ss:$16 sps:$4 sm:$0xff]   ;;  %v1244_v43 = vld [vmem:[%s1679_s0 + $0x48] ss:$16 sps:$4 sm:$0xff]  }
  0x27   :  { %v1245_v44 = vld [vmem:[%s1679_s0 + $0x64] ss:$16 sps:$4 sm:$0xff]   ;;  %v1247_v45 = vld [vmem:[%s1679_s0 + $0x6c] ss:$16 sps:$4 sm:$0xff]   ;;  %v1249_v46 = vld [vmem:[%s1679_s0 + $0x60] ss:$16 sps:$4 sm:$0xff]  }
  0x28   :  { %v1250_v47 = vld [vmem:[%s1679_s0 + $0x68] ss:$16 sps:$4 sm:$0xff]   ;;  %vm524_vm0 = vcmask 261120   ;;  %vm1298_vm1 = vmmov 0   ;;  %vm899_vm2 = vcmask 15360   ;;  %vm988_vm3 = vcmask 8192  }
  0x2b   :  { %427 = vmatmul.mubr.bf16.gmra.mrb[4].mxu0 %v1237_v38 }
  0x2c   :  { %492 = vmatmul.mubr.bf16.gmra.mrb[4].mxu1 %v1238_v39  ;;  %434 = vmatprep.mubr.bf16.mxu0 %v1239_v40 }
  0x2d   :  { %499 = vmatprep.mubr.bf16.mxu1 %v1241_v41 }
  0x33   :  { %435 = vmatmul.mubr.bf16.gmra.mrb[8].mxu0 %v1243_v42 }
  0x34   :  { %500 = vmatmul.mubr.bf16.gmra.mrb[8].mxu1 %v1244_v43  ;;  %442 = vmatprep.mubr.bf16.mxu0 %v1245_v44 }
  0x35   :  { %507 = vmatprep.mubr.bf16.mxu1 %v1247_v45 }
  0x3b   :  { %443 = vmatmul.mubr.bf16.gmra.mrb[12].mxu0 %v1249_v46 }
  0x3c   :  { %508 = vmatmul.mubr.bf16.gmra.mrb[12].mxu1 %v1250_v47 }
  0xf6   :  { %v1071_v48 = vpop.f32.mrb[0].mxu0 }
  0xf7   :  { %v1111_v49 = vpop.f32.mrb[0].mxu1  ;;  %v1072_v50 = vpop.f32.mrb[1].mxu0 }
  0xf8   :  { %v1073_v51 = vadd.f32 %v1072_v50, %v1071_v48  ;;  %v1112_v52 = vpop.f32.mrb[1].mxu1  ;;  %v1074_v53 = vpop.f32.mrb[2].mxu0  ;;  %v1295_v48 = vmov 1  }
  0xf9   :  { %v1113_v54 = vadd.f32 %v1112_v52, %v1111_v49  ;;  %v1114_v55 = vpop.f32.mrb[2].mxu1  ;;  %v1075_v56 = vpop.f32.mrb[3].mxu0  ;;  %1188 = vset.pattern.permute.xlu1 %v1295_v48 }
  0xfa   :  { %v1076_v57 = vadd.f32 %v1075_v56, %v1074_v53  ;;  %v1115_v58 = vpop.f32.mrb[3].mxu1 }
  0xfb   :  { %v1116_v59 = vadd.f32 %v1115_v58, %v1114_v55  ;;  %v1495_v60 = vadd.f32 %v1113_v54, %v1073_v51 }
  0xfd   :  { %v525_v61 = vsel %vm524_vm0, %v1495_v60, 0.0  ;;  %v1499_v62 = vadd.f32 %v1116_v59, %v1076_v57 }
  0xfe   :  { %526 = vadd.xlane.f32.xlu0 %v525_v61  ;;  %v1077_v63 = vpop.f32.mrb[4].mxu0 }
  0xff   :  { %v1117_v0 = vpop.f32.mrb[4].mxu1  ;;  %v1078_v1 = vpop.f32.mrb[5].mxu0  ;;  %v528_v8 = vsel %vm524_vm0, %v1499_v62, 0.0 }
 0x100   :  { %v1079_v2 = vadd.f32 %v1078_v1, %v1077_v63  ;;  %v1118_v3 = vpop.f32.mrb[5].mxu1  ;;  %v1080_v4 = vpop.f32.mrb[6].mxu0 }
 0x101   :  { %v1119_v5 = vadd.f32 %v1118_v3, %v1117_v0  ;;  %v1120_v6 = vpop.f32.mrb[6].mxu1  ;;  %v1081_v7 = vpop.f32.mrb[7].mxu0 }
 0x102   :  { %v1082_v9 = vadd.f32 %v1081_v7, %v1080_v4  ;;  %v1121_v10 = vpop.f32.mrb[7].mxu1  ;;  %529 = vadd.xlane.f32.xlu0 %v528_v8 }
 0x103   :  { %v1122_v11 = vadd.f32 %v1121_v10, %v1120_v6  ;;  %v494_v12 = vadd.f32 %v1119_v5, %v1079_v2 }
 0x105   :  { %v531_v13 = vsel %vm524_vm0, %v494_v12, 0.0  ;;  %v497_v14 = vadd.f32 %v1122_v11, %v1082_v9 }
 0x106   :  { %532 = vadd.xlane.f32.xlu1 %v531_v13  ;;  %v1083_v15 = vpop.f32.mrb[8].mxu0 }
 0x107   :  { %v1123_v16 = vpop.f32.mrb[8].mxu1  ;;  %v1084_v17 = vpop.f32.mrb[9].mxu0  ;;  %v534_v24 = vsel %vm524_vm0, %v497_v14, 0.0 }
 0x108   :  { %v1085_v18 = vadd.f32 %v1084_v17, %v1083_v15  ;;  %v1124_v19 = vpop.f32.mrb[9].mxu1  ;;  %v1086_v20 = vpop.f32.mrb[10].mxu0 }
 0x109   :  { %v1125_v21 = vadd.f32 %v1124_v19, %v1123_v16  ;;  %v1126_v22 = vpop.f32.mrb[10].mxu1  ;;  %v1087_v23 = vpop.f32.mrb[11].mxu0 }
 0x10a   :  { %v1088_v25 = vadd.f32 %v1087_v23, %v1086_v20  ;;  %v1127_v26 = vpop.f32.mrb[11].mxu1  ;;  %535 = vadd.xlane.f32.xlu1 %v534_v24 }
 0x10b   :  { %v1128_v27 = vadd.f32 %v1127_v26, %v1126_v22  ;;  %v502_v28 = vadd.f32 %v1125_v21, %v1085_v18  ;;  %v516_v26 = vld [vmem:[%s1681_s2] sm:$0xff] }
 0x10d   :  { %v537_v29 = vsel %vm524_vm0, %v502_v28, 0.0  ;;  %v505_v30 = vadd.f32 %v1128_v27, %v1088_v25  ;;  %v1296_v25 = vmov 0   ;;  %v517_v27 = vld [vmem:[%s1681_s2 + $0x8] sm:$0xff] }
 0x10e   :  { %538 = vadd.xlane.f32.xlu0 %v537_v29  ;;  %v1089_v31 = vpop.f32.mrb[12].mxu0  ;;  %v519_v29 = vld [vmem:[%s1681_s2 + $0x18] sm:$0xff] }
 0x10f   :  { %v1129_v32 = vpop.f32.mrb[12].mxu1  ;;  %v1090_v33 = vpop.f32.mrb[13].mxu0  ;;  %v540_v34 = vsel %vm524_vm0, %v505_v30, 0.0  ;;  %1189 = vset.pattern.permute.xlu0 %v1296_v25 }
 0x110   :  { %v1091_v35 = vadd.f32 %v1090_v33, %v1089_v31  ;;  %v1130_v36 = vpop.f32.mrb[13].mxu1  ;;  %541 = vadd.xlane.f32.xlu1 %v540_v34  ;;  %v1092_v37 = vpop.f32.mrb[14].mxu0  ;;  %v743_v31 = vld [vmem:[%s1684_s5] sm:$0xff] }
 0x111   :  { %v1131_v38 = vadd.f32 %v1130_v36, %v1129_v32  ;;  %v1132_v39 = vpop.f32.mrb[14].mxu1  ;;  %v1093_v40 = vpop.f32.mrb[15].mxu0  ;;  %v744_v32 = vld [vmem:[%s1684_s5 + $0x8] sm:$0xff] }
 0x112   :  { %v1094_v41 = vadd.f32 %v1093_v40, %v1092_v37  ;;  %v1133_v42 = vpop.f32.mrb[15].mxu1  ;;  %v1168_v33 = vpack.c.bf16 %v744_v32, %v743_v31  ;;  %v883_v32 = vld [vmem:[%s1687_s8 + $0x10] sm:$0xff] }
 0x113   :  { %v1134_v43 = vadd.f32 %v1133_v42, %v1132_v39  ;;  %v510_v44 = vadd.f32 %v1131_v38, %v1091_v35 }
 0x114   :  { %1169 = vmatprep.subr.bf16.mxu0 %v1168_v33 }
 0x115   :  { %v543_v45 = vsel %vm524_vm0, %v510_v44, 0.0  ;;  %v513_v46 = vadd.f32 %v1134_v43, %v1094_v41  ;;  %1171 = vmatpush3.bf16.msra.mxu0 %v1168_v33  ;;  %v884_v33 = vld [vmem:[%s1687_s8 + $0x18] sm:$0xff] }
 0x116   :  { %544 = vadd.xlane.f32.xlu0 %v543_v45 }
 0x117   :  { %v546_v47 = vsel %vm524_vm0, %v513_v46, 0.0 }
 0x118   :  { %547 = vadd.xlane.f32.xlu1 %v546_v47 }
 0x18b   :  { %v527_v49 = vpop.xlane.xlu0 %526 }
 0x18c   :  { %v549_v50 = vmul.f32 0.03125, %v527_v49 }
 0x18e   :  { %v1511_v51 = vsub.f32 %v1495_v60, %v549_v50 }
 0x18f   :  { %v530_v52 = vpop.xlane.xlu0 %529 }
 0x190   :  { %v550_v53 = vmul.f32 0.03125, %v530_v52  ;;  %v565_v54 = vmul.f32 %v1511_v51, %v1511_v51 }
 0x192   :  { %v1516_v55 = vsub.f32 %v1499_v62, %v550_v53  ;;  %v573_v56 = vsel %vm524_vm0, %v565_v54, 0.0 }
 0x193   :  { %v533_v57 = vpop.xlane.xlu1 %532  ;;  %574 = vadd.xlane.f32.xlu0 %v573_v56 }
 0x194   :  { %v551_v58 = vmul.f32 0.03125, %v533_v57  ;;  %v566_v59 = vmul.f32 %v1516_v55, %v1516_v55 }
 0x196   :  { %v1521_v61 = vsub.f32 %v494_v12, %v551_v58  ;;  %v576_v60 = vsel %vm524_vm0, %v566_v59, 0.0 }
 0x197   :  { %v536_v63 = vpop.xlane.xlu1 %535  ;;  %577 = vadd.xlane.f32.xlu1 %v576_v60 }
 0x198   :  { %v552_v0 = vmul.f32 0.03125, %v536_v63  ;;  %v567_v1 = vmul.f32 %v1521_v61, %v1521_v61 }
 0x19a   :  { %v1526_v62 = vsub.f32 %v497_v14, %v552_v0  ;;  %v579_v2 = vsel %vm524_vm0, %v567_v1, 0.0 }
 0x19b   :  { %580 = vadd.xlane.f32.xlu0 %v579_v2  ;;  %v539_v3 = vpop.xlane.xlu0 %538 }
 0x19c   :  { %v553_v4 = vmul.f32 0.03125, %v539_v3  ;;  %v568_v5 = vmul.f32 %v1526_v62, %v1526_v62 }
 0x19d   :  { %v542_v6 = vpop.xlane.xlu1 %541 }
 0x19e   :  { %v1531_v7 = vsub.f32 %v502_v28, %v553_v4  ;;  %v554_v8 = vmul.f32 0.03125, %v542_v6  ;;  %v582_v9 = vsel %vm524_vm0, %v568_v5, 0.0  ;;  %v518_v28 = vld [vmem:[%s1681_s2 + $0x10] sm:$0xff]  ;;  %v746_v6 = vld [vmem:[%s1684_s5 + $0x18] sm:$0xff] }
 0x19f   :  { %583 = vadd.xlane.f32.xlu1 %v582_v9  ;;  %v745_v5 = vld [vmem:[%s1684_s5 + $0x10] sm:$0xff] }
 0x1a0   :  { %v1534_v10 = vsub.f32 %v505_v30, %v554_v8  ;;  %v569_v11 = vmul.f32 %v1531_v7, %v1531_v7  ;;  %v520_v30 = vld [vmem:[%s1681_s2 + $0x20] sm:$0xff]  ;;  %v1172_v9 = vpack.c.bf16 %v746_v6, %v745_v5 }
 0x1a2   :  { %v585_v12 = vsel %vm524_vm0, %v569_v11, 0.0  ;;  %v570_v13 = vmul.f32 %v1534_v10, %v1534_v10  ;;  %1173 = vmatprep.subr.bf16.mxu0 %v1172_v9 }
 0x1a3   :  { %586 = vadd.xlane.f32.xlu0 %v585_v12  ;;  %v545_v14 = vpop.xlane.xlu0 %544  ;;  %1175 = vmatpush3.bf16.msra.mxu0 %v1172_v9 }
 0x1a4   :  { %v555_v15 = vmul.f32 0.03125, %v545_v14  ;;  %v588_v16 = vsel %vm524_vm0, %v570_v13, 0.0  ;;  %v521_v13 = vld [vmem:[%s1681_s2 + $0x28] sm:$0xff] }
 0x1a5   :  { %v548_v17 = vpop.xlane.xlu1 %547  ;;  %589 = vadd.xlane.f32.xlu1 %v588_v16 }
 0x1a6   :  { %v1542_v18 = vsub.f32 %v510_v44, %v555_v15  ;;  %v556_v19 = vmul.f32 0.03125, %v548_v17  ;;  %v741_v15 = vld [vmem:[%s1682_s3] sm:$0xff]  ;;  %v742_v17 = vld [vmem:[%s1682_s3 + $0x8] sm:$0xff] }
 0x1a7   :  { %1154 = vmatprep.mubr.msk.f32.mxu0 %vm524_vm0, %v741_v15 }
 0x1a8   :  { %v1544_v20 = vsub.f32 %v513_v46, %v556_v19  ;;  %v571_v21 = vmul.f32 %v1542_v18, %v1542_v18  ;;  %1155 = vmatmul.mubr.msk.f32.vlgmr.msra.gmra.mrb[16].mxu0 %vm524_vm0, %v742_v17 }
 0x1aa   :  { %v591_v22 = vsel %vm524_vm0, %v571_v21, 0.0  ;;  %v572_v23 = vmul.f32 %v1544_v20, %v1544_v20  ;;  %v522_v21 = vld [vmem:[%s1681_s2 + $0x30] sm:$0xff] }
 0x1ab   :  { %592 = vadd.xlane.f32.xlu0 %v591_v22 }
 0x1ac   :  { %v594_v24 = vsel %vm524_vm0, %v572_v23, 0.0 }
 0x1ad   :  { %595 = vadd.xlane.f32.xlu1 %v594_v24 }
 0x1be   :  { %679 = vperm.xlu1 %1188, %v516_v26  }
 0x1c2   :  { %684 = vperm.xlu1 %1188, %v517_v27  }
 0x1c6   :  { %689 = vperm.xlu1 %1188, %v518_v28  }
 0x1ca   :  { %694 = vperm.xlu1 %1188, %v519_v29  }
 0x1ce   :  { %699 = vperm.xlu1 %1188, %v520_v30  }
 0x1d2   :  { %1190 = vset.pattern.permute.xlu1 %v1296_v25 }
 0x220   :  { %v575_v34 = vpop.xlane.xlu0 %574 }
 0x221   :  { %v597_v35 = vmul.f32 0.03125, %v575_v34  ;;  %v1180_v34 = vpack.c.bf16 %v884_v33, %v883_v32  ;;  %v849_v33 = vld [vmem:[%s1685_s6 + $0x28] sm:$0xff] }
 0x223   :  { %v605_v36 = vadd.f32 1e-05, %v597_v35  ;;  %v1299_v35 = vmov 0.0  }
 0x224   :  { %v578_v37 = vpop.xlane.xlu1 %577  ;;  %1165 = vmatprep.mubr.msk.f32.mxu1 %vm1298_vm1, %v1299_v35 }
 0x225   :  { %1251 = vrsqrt.f32 %v605_v36  ;;  %v598_v38 = vmul.f32 0.03125, %v578_v37  ;;  %v748_v36 = vld [vmem:[%s1683_s4 + $0x8] sm:$0xff] }
 0x226   :  { %v886_v37 = vld [vmem:[%s1686_s7 + $0x8] sm:$0xff] }
 0x227   :  { %v606_v39 = vadd.f32 1e-05, %v598_v38 }
 0x228   :  { %v581_v40 = vpop.xlane.xlu0 %580 }
 0x229   :  { %1253 = vrsqrt.f32 %v606_v39  ;;  %v599_v41 = vmul.f32 0.03125, %v581_v40 }
 0x22b   :  { %v607_v42 = vadd.f32 1e-05, %v599_v41 }
 0x22c   :  { %v584_v43 = vpop.xlane.xlu1 %583 }
 0x22d   :  { %1255 = vrsqrt.f32 %v607_v42  ;;  %v600_v44 = vmul.f32 0.03125, %v584_v43 }
 0x22f   :  { %v1252_v45 = vpop.eup %1251  ;;  %v608_v46 = vadd.f32 1e-05, %v600_v44 }
 0x230   :  { %v587_v47 = vpop.xlane.xlu0 %586  ;;  %v621_v49 = vmul.f32 %v1252_v45, %v516_v26  ;;  %v523_v26 = vld [vmem:[%s1681_s2 + $0x38] sm:$0xff] }
 0x231   :  { %1257 = vrsqrt.f32 %v608_v46  ;;  %v601_v50 = vmul.f32 0.03125, %v587_v47 }
 0x232   :  { %v590_v52 = vpop.xlane.xlu1 %589  ;;  %631 = vperm.xlu0 %1189, %v621_v49  }
 0x233   :  { %v1254_v53 = vpop.eup %1253  ;;  %v609_v54 = vadd.f32 1e-05, %v601_v50  ;;  %v602_v56 = vmul.f32 0.03125, %v590_v52 }
 0x234   :  { %v622_v57 = vmul.f32 %v1254_v53, %v517_v27 }
 0x235   :  { %1259 = vrsqrt.f32 %v609_v54  ;;  %v610_v58 = vadd.f32 1e-05, %v602_v56 }
 0x236   :  { %636 = vperm.xlu1 %1190, %v622_v57  }
 0x237   :  { %v1256_v59 = vpop.eup %1255  ;;  %1261 = vrsqrt.f32 %v610_v58 }
 0x238   :  { %v593_v60 = vpop.xlane.xlu0 %592  ;;  %v623_v63 = vmul.f32 %v1256_v59, %v518_v28  ;;  %v881_v28 = vld [vmem:[%s1687_s8] sm:$0xff] }
 0x239   :  { %v603_v0 = vmul.f32 0.03125, %v593_v60 }
 0x23a   :  { %v596_v1 = vpop.xlane.xlu1 %595  ;;  %641 = vperm.xlu1 %1190, %v623_v63  }
 0x23b   :  { %v1258_v2 = vpop.eup %1257  ;;  %v611_v3 = vadd.f32 1e-05, %v603_v0  ;;  %v604_v4 = vmul.f32 0.03125, %v596_v1 }
 0x23c   :  { %v624_v8 = vmul.f32 %v1258_v2, %v519_v29  ;;  %v882_v29 = vld [vmem:[%s1687_s8 + $0x8] sm:$0xff] }
 0x23d   :  { %1263 = vrsqrt.f32 %v611_v3  ;;  %v612_v11 = vadd.f32 1e-05, %v604_v4  ;;  %v1177_v31 = vpack.c.bf16 %v882_v29, %v881_v28 }
 0x23e   :  { %646 = vperm.xlu1 %1190, %v624_v8   ;;  %v680_v38 = vpop.permute.xlu1 %679 }
 0x23f   :  { %v1260_v12 = vpop.eup %1259  ;;  %1265 = vrsqrt.f32 %v612_v11 }
 0x240   :  { %v625_v14 = vmul.f32 %v1260_v12, %v520_v30  ;;  %v1297_v30 = vmov 0.0|0.0  }
 0x241   :  { %v1262_v16 = vpop.eup %1261  ;;  %1176 = vmatprep.subr.bf16.mxu1 %v1297_v30 }
 0x242   :  { %651 = vperm.xlu1 %1190, %v625_v14   ;;  %v626_v19 = vmul.f32 %v1262_v16, %v521_v13  ;;  %1178 = vmatpush3.bf16.msra.mxu1 %v1177_v31  ;;  %v685_v39 = vpop.permute.xlu1 %684 }
 0x243   :  { %1179 = vmatprep.subr.bf16.mxu1 %v1297_v30 }
 0x244   :  { %656 = vperm.xlu0 %1189, %v626_v19   ;;  %v848_v19 = vld [vmem:[%s1685_s6 + $0x20] sm:$0xff] }
 0x246   :  { %1191 = vset.pattern.permute.xlu1 %v1295_v48  ;;  %1181 = vmatpush3.bf16.msra.mxu1 %v1180_v34  ;;  %v690_v40 = vpop.permute.xlu1 %689 }
 0x247   :  { %v1264_v22 = vpop.eup %1263  ;;  %704 = vperm.xlu1 %1191, %v521_v13   ;;  %v847_v13 = vld [vmem:[%s1685_s6 + $0x18] sm:$0xff] }
 0x248   :  { %v627_v23 = vmul.f32 %v1264_v22, %v522_v21 }
 0x249   :  { %v1266_v24 = vpop.eup %1265 }
 0x24a   :  { %661 = vperm.xlu0 %1189, %v627_v23   ;;  %v628_v27 = vmul.f32 %v1266_v24, %v523_v26  ;;  %v695_v41 = vpop.permute.xlu1 %694 }
 0x24b   :  { %709 = vperm.xlu1 %1191, %v522_v21  }
 0x24e   :  { %666 = vperm.xlu0 %1189, %v628_v27   ;;  %v700_v42 = vpop.permute.xlu1 %699 }
 0x24f   :  { %1193 = vset.pattern.permute.xlu1 %v1296_v25 }
 0x252   :  { %1192 = vset.pattern.permute.xlu0 %v1295_v48  ;;  %v747_v48 = vld [vmem:[%s1683_s4] sm:$0xff] }
 0x253   :  { %714 = vperm.xlu0 %1192, %v523_v26   ;;  %751 = vperm.xlu1 %1193, %v747_v48   ;;  %v850_v48 = vld [vmem:[%s1685_s6 + $0x30] sm:$0xff] }
 0x257   :  { %1194 = vset.pattern.permute.xlu0 %v1296_v25  ;;  %v885_v25 = vld [vmem:[%s1686_s7] sm:$0xff]  ;;  %756 = vperm.xlu1 %1193, %v748_v36  }
 0x258   :  { %889 = vperm.xlu0 %1194, %v885_v25  }
 0x25b   :  { %894 = vperm.xlu1 %1193, %v886_v37  }
 0x2b1   :  { %v632_v44 = vpop.permute.xlu0 %631 }
 0x2b2   :  { %v669_v46 = vmul.f32 %v632_v44, %v1511_v51  ;;  %v845_v51 = vld [vmem:[%s1685_s6 + $0x8] sm:$0xff] }
 0x2b4   :  { %v717_v52 = vadd.f32 %v680_v38, %v669_v46  ;;  %v851_v46 = vld [vmem:[%s1685_s6 + $0x38] sm:$0xff] }
 0x2b5   :  { %v637_v43 = vpop.permute.xlu1 %636 }
 0x2b6   :  { %v670_v45 = vmul.f32 %v637_v43, %v1516_v55  ;;  %v725_v59 = vmul.f32 0.2, %v717_v52 }
 0x2b8   :  { %v718_v50 = vadd.f32 %v685_v39, %v670_v45  ;;  %v733_v4 = vmax.f32 %v717_v52, %v725_v59 }
 0x2b9   :  { %v642_v47 = vpop.permute.xlu1 %641 }
 0x2ba   :  { %v671_v49 = vmul.f32 %v642_v47, %v1521_v61  ;;  %v726_v57 = vmul.f32 0.2, %v718_v50 }
 0x2bc   :  { %v719_v53 = vadd.f32 %v690_v40, %v671_v49  ;;  %v734_v1 = vmax.f32 %v718_v50, %v726_v57 }
 0x2bd   :  { %v647_v54 = vpop.permute.xlu1 %646 }
 0x2be   :  { %v672_v56 = vmul.f32 %v647_v54, %v1526_v62  ;;  %v727_v60 = vmul.f32 0.2, %v719_v53  ;;  %v844_v62 = vld [vmem:[%s1685_s6] sm:$0xff]  ;;  %v853_v9 = vmul.f32 %v845_v51, %v734_v1 }
 0x2c0   :  { %v720_v58 = vadd.f32 %v695_v41, %v672_v56  ;;  %v735_v5 = vmax.f32 %v719_v53, %v727_v60  ;;  %v861_v23 = vsel %vm524_vm0, %v853_v9, 0.0 }
 0x2c1   :  { %v652_v63 = vpop.permute.xlu1 %651 }
 0x2c2   :  { %v673_v0 = vmul.f32 %v652_v63, %v1531_v7  ;;  %v728_v55 = vmul.f32 0.2, %v720_v58  ;;  %v846_v7 = vld [vmem:[%s1685_s6 + $0x10] sm:$0xff]  ;;  %s1300_s6 = smov [#allocation2]  }
 0x2c3   :  { %v657_v2 = vpop.permute.xlu0 %656  ;;  %v854_v14 = vmul.f32 %v846_v7, %v735_v5  ;;  %s996_s24 = sshll.u32 %s1300_s6, 4  ;;  %s997_s24 = int_to_ptr.vmem [resolvable:$true] %s996_s24 }
 0x2c4   :  { %v721_v61 = vadd.f32 %v700_v42, %v673_v0  ;;  %v674_v3 = vmul.f32 %v657_v2, %v1534_v10  ;;  %v736_v11 = vmax.f32 %v720_v58, %v728_v55  ;;  %v852_v10 = vmul.f32 %v844_v62, %v733_v4  ;;  %v1156_v55 = vpop.f32.mrb[16].mxu0  ;;  %s1271_s2 = scalar_lea.vmem %s997_s24, 16  ;;  %s1275_s25 = scalar_lea.vmem %s997_s24, 32 }
 0x2c5   :  { %v863_v28 = vsel %vm524_vm0, %v854_v14, 0.0  ;;  %v831_v2 = vpop.f32.mrb[17].mxu0  ;;  %p1272_p0 = scmp.ne.s32.totalorder %s997_s24, %s1271_s2  ;;  %p1276_p1 = scmp.lt.s32.totalorder %s997_s24, %s997_s24 }
 0x2c6   :  { %v729_v6 = vmul.f32 0.2, %v721_v61  ;;  %v705_v8 = vpop.permute.xlu1 %704  ;;  %v855_v24 = vmul.f32 %v847_v13, %v736_v11  ;;  %v860_v27 = vsel %vm524_vm0, %v852_v10, 0.0  ;;  %p1277_p2 = scmp.lt.s32.totalorder %s1275_s25, %s1271_s2 }
 0x2c7   :  { %v722_v12 = vadd.f32 %v705_v8, %v674_v3  ;;  %v862_v32 = vadd.f32 %v861_v23, %v860_v27 }
 0x2c8   :  { %v737_v15 = vmax.f32 %v721_v61, %v729_v6  ;;  %p1278_p3 = por %p1277_p2, %p1276_p1 }
 0x2c9   :  { %v730_v16 = vmul.f32 0.2, %v722_v12  ;;  %v662_v17 = vpop.permute.xlu0 %661  ;;  %v864_v35 = vadd.f32 %v863_v28, %v862_v32 }
 0x2ca   :  { %v675_v21 = vmul.f32 %v662_v17, %v1542_v18  ;;  %v710_v22 = vpop.permute.xlu1 %709  ;;  %v856_v29 = vmul.f32 %v848_v19, %v737_v15  ;;  %v865_v18 = vsel %vm524_vm0, %v855_v24, 0.0  ;;  %p1279_p4 = pnand %p1278_p3, %p1272_p0 }
 0x2cb   :  { %v738_v30 = vmax.f32 %v722_v12, %v730_v16  ;;  %v866_v39 = vadd.f32 %v865_v18, %v864_v35 }
 0x2cc   :  { %v723_v26 = vadd.f32 %v710_v22, %v675_v21  ;;  %v867_v36 = vsel %vm524_vm0, %v856_v29, 0.0 }
 0x2cd   :  { %v667_v31 = vpop.permute.xlu0 %666  ;;  %v857_v37 = vmul.f32 %v849_v33, %v738_v30  ;;  %v868_v43 = vadd.f32 %v867_v36, %v866_v39 }
 0x2ce   :  { %v731_v34 = vmul.f32 0.2, %v723_v26  ;;  %v676_v38 = vmul.f32 %v667_v31, %v1544_v20 }
 0x2cf   :  { %v869_v44 = vsel %vm524_vm0, %v857_v37, 0.0 }
 0x2d0   :  { %v739_v25 = vmax.f32 %v723_v26, %v731_v34  ;;  %v870_v50 = vadd.f32 %v869_v44, %v868_v43 }
 0x2d2   :  { %v715_v40 = vpop.permute.xlu0 %714  ;;  %v858_v41 = vmul.f32 %v850_v48, %v739_v25  ;;  %v752_v0 = vpop.permute.xlu1 %751 }
 0x2d3   :  { %v724_v42 = vadd.f32 %v715_v40, %v676_v38  ;;  %v832_v61 = vadd.f32 %v831_v2, %v752_v0 }
 0x2d4   :  { %v871_v47 = vsel %vm524_vm0, %v858_v41, 0.0 }
 0x2d5   :  { %v732_v45 = vmul.f32 0.2, %v724_v42  ;;  %v872_v53 = vadd.f32 %v871_v47, %v870_v50  ;;  %v840_v4 = vmul.f32 0.2, %v832_v61 }
 0x2d6   :  { %v757_v1 = vpop.permute.xlu1 %756 }
 0x2d7   :  { %v740_v49 = vmax.f32 %v724_v42, %v732_v45  ;;  %v837_v51 = vadd.f32 %v1156_v55, %v757_v1  ;;  %v890_v7 = vpop.permute.xlu0 %889  ;;  %v842_v6 = vmax.f32 %v832_v61, %v840_v4 }
 0x2d9   :  { %v859_v52 = vmul.f32 %v851_v46, %v740_v49  ;;  %v841_v3 = vmul.f32 0.2, %v837_v51  ;;  %v897_v9 = vmul.f32 %v890_v7, %v842_v6 }
 0x2da   :  { %v895_v5 = vpop.permute.xlu1 %894 }
 0x2db   :  { %v873_v20 = vsel %vm524_vm0, %v859_v52, 0.0  ;;  %v843_v62 = vmax.f32 %v837_v51, %v841_v3  ;;  %v900_v12 = vsel %vm899_vm2, %v897_v9, 0.0 }
 0x2dc   :  { %v874_v54 = vadd.f32 %v873_v20, %v872_v53 }
 0x2dd   :  { %v898_v8 = vmul.f32 %v895_v5, %v843_v62 }
 0x2de   :  { %v875_v56 = vrot.slane %v874_v54, 4 }
 0x2df   :  { %v901_v11 = vsel %vm899_vm2, %v898_v8, 0.0 }
 0x2e0   :  { %v876_v57 = vadd.f32 %v875_v56, %v874_v54  ;;  %v902_v13 = vadd.f32 %v901_v11, %v900_v12 }
 0x2e2   :  { %v877_v58 = vrot.slane %v876_v57, 2  ;;  %v903_v10 = vrot.slane %v902_v13, 4 }
 0x2e4   :  { %v878_v59 = vadd.f32 %v877_v58, %v876_v57  ;;  %v904_v14 = vadd.f32 %v903_v10, %v902_v13 }
 0x2e6   :  { %v879_v60 = vrot.slane %v878_v59, 1  ;;  %v905_v15 = vrot.slane %v904_v14, 2 }
 0x2e8   :  { %v880_v63 = vadd.f32 %v879_v60, %v878_v59  ;;  %v906_v16 = vadd.f32 %v905_v15, %v904_v14 }
 0x2ea   :  { %1166 = vmatmul.mubr.msk.f32.vlgmr.msra.gmra.mrb[16].mxu1 %vm524_vm0, %v880_v63  ;;  %v907_v17 = vrot.slane %v906_v16, 1 }
 0x2ec   :  { %v908_v19 = vadd.f32 %v907_v17, %v906_v16 }
 0x3bd   :  { %v978_v21 = vpop.f32.mrb[16].mxu1 }
 0x3be   :  { %v979_v22 = vadd.f32 %v978_v21, %v908_v19  ;;  %v1167_v23 = vpop.f32.mrb[17].mxu1 }
 0x3c0   :  { %v982_v24 = vsub.f32 0.0, %v979_v22 }
 0x3c2   :  { %v983_v26 = vmul.f32 1.442695, %v982_v24 }
 0x3c4   :  { %1267 = vpow2.f32 %v983_v26 }
 0x3ce   :  { %v1268_v27 = vpop.eup %1267 }
 0x3cf   :  { %v985_v28 = vadd.f32 1.0, %v1268_v27 }
 0x3d1   :  { %1269 = vrcp.f32 %v985_v28 }
 0x3db   :  { %v1270_v29 = vpop.eup %1269 }
 0x3dc   :  { %989 = vst.msk [vmem:[#allocation2] sm:$0x1] %vm988_vm3, %v1270_v29 }
 0x3dd   :  { %1282 = shalt.err (!%p1279_p4)
}
 0x3de   :  { %s1283_s28 = scalar_lea.hbm %s1688_s9, 16 }
 0x3df   :  { %p1284_p5 = scmp.ne.s32.totalorder %s1688_s9, %s1283_s28  ;;  %p1287_p6 = scmp.lt.u32.totalorder %s1283_s28, %s1688_s9 }
 0x3e1   :  { %p1289_p7 = pnand %p1287_p6, %p1284_p5 }
 0x3e3   :  { %1292 = shalt.err (!%p1289_p7)
}
 0x3e4   :  { %999 = dma.vmem_to_hbm [thread:$0]  %s997_s24, 16, %s1688_s9, [#allocation3]  }
 0x3e5   :  { %1293 = dma.done.wait [#allocation3], 16  }
 0x3e6   :  { %1294 = vsyncadd [#allocation3], 4294967280 }
 0x3e7   :  { %1003 = vsyncpa [#allocation3], 1 }

</bundles_post_ra>
